<compile_context>
chip_gen: v7x
topology: tpu7x:2x2x1
jax: 0.10.0
libtpu: 0.0.40
codegen_flags: <defaults>
</compile_context>

<pallas_src>
import functools

import jax
import jax.numpy as jnp
from jax import lax
from jax.experimental import pallas as pl
from jax.experimental.pallas import tpu as pltpu


# ------------------------------ small helpers ------------------------------

def _round_up(x, m):
    return ((x + m - 1) // m) * m


def _layernorm(x, gamma, beta, eps=1e-5):
    mu = jnp.mean(x, axis=-1, keepdims=True)
    var = jnp.mean((x - mu) ** 2, axis=-1, keepdims=True)
    return (x - mu) * lax.rsqrt(var + eps) * gamma + beta


def _softmax(x):
    m = jnp.max(x, axis=-1, keepdims=True)
    e = jnp.exp(x - m)
    return e * pl.reciprocal(jnp.sum(e, axis=-1, keepdims=True), approx=True)


def _sigmoid(x):
    # numerically safe sigmoid via tanh (EUP), avoids exp overflow.
    return 0.5 * (jnp.tanh(0.5 * x) + 1.0)


# --------------------------------- kernel ----------------------------------

def entity_head_kernel(x_ref, w1_ref, w2_ref, wh_ref, vecs_ref, out_ref,
                       *, C, NT, Hq):
    TB, S, D = x_ref.shape
    H1 = w1_ref.shape[1]
    H2 = w2_ref.shape[1]
    NHP = wh_ref.shape[1]          # padded fused-head width (multiple of 128)
    OUT_W = out_ref.shape[1]

    # -------- unpack the packed vector slab (biases / LN affine / wq2) ------
    b1, g1, be1 = vecs_ref[0:1, :H1], vecs_ref[1:2, :H1], vecs_ref[2:3, :H1]
    b2, g2, be2 = vecs_ref[3:4, :H2], vecs_ref[4:5, :H2], vecs_ref[5:6, :H2]
    bh = vecs_ref[6:7, :NHP]
    wq2 = vecs_ref[7:8, :Hq]
    bq2 = vecs_ref[8:9, 0:1]

    # -------- feature extractor on the whole (TB*S, D) slab ------------------
    # bf16 MXU operands, f32 accumulation / LayerNorm.
    x = x_ref[...].reshape(TB * S, D)                       # bf16

    h = jnp.dot(x, w1_ref[...], preferred_element_type=jnp.float32) + b1
    h = jnp.maximum(_layernorm(h, g1, be1), 0.0)            # Dropout: eval no-op

    h = jnp.dot(h.astype(jnp.bfloat16), w2_ref[...],
                preferred_element_type=jnp.float32) + b2
    h = jnp.maximum(_layernorm(h, g2, be2), 0.0)

    # -------- sum pooling over seq (1/S folded into wh host-side) ------------
    pooled = jnp.sum(h.reshape(TB, S, H2), axis=1).astype(jnp.bfloat16)

    # -------- fused heads: [classifier | type_classifier | conf layer 1] -----
    head = jnp.dot(pooled, wh_ref[...], preferred_element_type=jnp.float32) + bh

    logits = head[:, :C]                                    # [TB, C]
    tlog = head[:, C:C + NT]                                # [TB, NT]
    q = jnp.maximum(head[:, C + NT:C + NT + Hq], 0.0)       # [TB, Hq]

    probs = _softmax(logits)
    tprob = _softmax(tlog)

    # argmax over classes (first index of maximum), batched over TB rows
    idx = lax.broadcasted_iota(jnp.int32, logits.shape, 1)
    lmax = jnp.max(logits, axis=-1, keepdims=True)
    pred = jnp.min(jnp.where(logits == lmax, idx, C), axis=-1, keepdims=True)

    # confidence: second linear layer is a [Hq] dot -> reduction, then sigmoid
    conf = _sigmoid(jnp.sum(q * wq2, axis=-1, keepdims=True) + bq2)

    # uncertainty = entropy of class distribution
    unc = -jnp.sum(probs * jnp.log(probs + 1e-8), axis=-1, keepdims=True)

    # -------- single lane-dense, unmasked output store -----------------------
    used = 2 * C + 2 * NT + 3
    pieces = [logits, probs, tlog, tprob,
              pred.astype(jnp.float32), conf, unc]
    if OUT_W > used:
        pieces.append(jnp.zeros((TB, OUT_W - used), jnp.float32))
    out_ref[...] = jnp.concatenate(pieces, axis=-1)


# ----------------------------- weight packing -------------------------------

def pack_params(params, num_classes, seq_len):
    w1 = jnp.asarray(params["w1"], jnp.float32)
    w2 = jnp.asarray(params["w2"], jnp.float32)
    D, H1 = w1.shape
    H2 = w2.shape[1]
    C = num_classes
    NT = params["wt"].shape[1]           # 8 entity types
    Hq = params["wq1"].shape[1]          # confidence hidden dim
    NH = C + NT + Hq
    NHP = _round_up(NH, 128)

    # fused head weight [H2, NHP] = [classifier | type | conf-1] + zero pad,
    # with the 1/S mean-pool scale folded in (bias is NOT scaled).
    inv_s = 1.0 / float(seq_len)
    wh = jnp.zeros((H2, NHP), jnp.float32)
    wh = wh.at[:, :C].set(jnp.asarray(params["wc"], jnp.float32) * inv_s)
    wh = wh.at[:, C:C + NT].set(jnp.asarray(params["wt"], jnp.float32) * inv_s)
    wh = wh.at[:, C + NT:NH].set(jnp.asarray(params["wq1"], jnp.float32) * inv_s)

    # packed vector slab: 9 rows x VW lanes (f32, feeds the VPU only)
    VW = _round_up(max(H1, H2, NHP, Hq, 1), 128)
    vecs = jnp.zeros((9, VW), jnp.float32)

    def setrow(v_arr, row, vals):
        vals = jnp.asarray(vals, jnp.float32).reshape(-1)
        return v_arr.at[row, :vals.shape[0]].set(vals)

    vecs = setrow(vecs, 0, params["b1"])
    vecs = setrow(vecs, 1, params["g1"])
    vecs = setrow(vecs, 2, params["be1"])
    vecs = setrow(vecs, 3, params["b2"])
    vecs = setrow(vecs, 4, params["g2"])
    vecs = setrow(vecs, 5, params["be2"])
    bh = jnp.concatenate(
        [jnp.asarray(params["bc"], jnp.float32).reshape(-1),
         jnp.asarray(params["bt"], jnp.float32).reshape(-1),
         jnp.asarray(params["bq1"], jnp.float32).reshape(-1)], axis=0)
    vecs = setrow(vecs, 6, bh)                    # fused head bias (pad = 0)
    vecs = setrow(vecs, 7, jnp.asarray(params["wq2"]).T)   # conf layer-2 weight
    vecs = setrow(vecs, 8, params["bq2"])         # conf layer-2 bias

    # MXU operands in bf16; vector slab stays f32.
    return (w1.astype(jnp.bfloat16), w2.astype(jnp.bfloat16),
            wh.astype(jnp.bfloat16), vecs, (H1, H2, C, NT, Hq))


# --------------------------------- wrapper -----------------------------------

def entity_classification_head(x, params, num_classes, *, target_rows=1024):
    B, S, D = x.shape
    # bf16 activations for the MXU / DMA path; no upcast if caller already bf16.
    if x.dtype != jnp.bfloat16:
        x = x.astype(jnp.bfloat16)

    w1, w2, wh, vecs, (H1, H2, C, NT, Hq) = pack_params(params, num_classes, S)
    NHP = wh.shape[1]
    VW = vecs.shape[1]

    # ---- batch block size: aim for ~target_rows rows per feature matmul ----
    tb_goal = max(1, target_rows // max(S, 1))
    if B <= tb_goal:
        TB = B
    else:
        TB = min(B, max(8, (tb_goal // 8) * 8))   # sublane-aligned blocks
    # v7x megacore: prefer >= 2 grid steps so the "parallel" axis shards
    # across both TensorCores, but only when blocks stay sublane-legal.
    if B >= 16 and pl.cdiv(B, TB) < 2:
        TB = max(8, (pl.cdiv(B, 2) // 8) * 8)

    grid = (pl.cdiv(B, TB),)                      # ragged tail handled by Pallas

    used = 2 * C + 2 * NT + 3
    OUT_W = _round_up(used, 128)

    # ---- explicit scoped-VMEM budget: never below the 32 MiB v6e/v7x default,
    # never above the 64 MiB physical VMEM of a v7x TensorCore. ----
    est = (
        2 * (TB * S * D * 2)                                  # bf16 x block, 2-buf
        + 2 * (TB * OUT_W * 4)                                # f32 out block, 2-buf
        + 2 * ((D * H1 + H1 * H2 + H2 * NHP) * 2 + 9 * VW * 4)  # weights/slab
        + TB * S * (H1 + H2) * 6                              # f32+bf16 intermediates
    )
    vmem_limit = int(min(64 << 20, max(32 << 20, 2 * est)))

    kernel = functools.partial(entity_head_kernel, C=C, NT=NT, Hq=Hq)

    def _run(single_buffer_weights):
        if single_buffer_weights and hasattr(pl, "Buffered"):
            def const_spec(shape):
                # grid-invariant inputs: no need for double buffering
                return pl.BlockSpec(shape, lambda b: (0, 0),
                                    pipeline_mode=pl.Buffered(1))
        else:
            def const_spec(shape):
                return pl.BlockSpec(shape, lambda b: (0, 0))

        return pl.pallas_call(
            kernel,
            out_shape=jax.ShapeDtypeStruct((B, OUT_W), jnp.float32),
            grid=grid,
            in_specs=[
                pl.BlockSpec((TB, S, D), lambda b: (b, 0, 0)),
                const_spec(w1.shape),
                const_spec(w2.shape),
                const_spec(wh.shape),
                const_spec(vecs.shape),
            ],
            out_specs=pl.BlockSpec((TB, OUT_W), lambda b: (b, 0)),
            compiler_params=pltpu.CompilerParams(
                dimension_semantics=("parallel",),
                vmem_limit_bytes=vmem_limit),
        )(x, w1, w2, wh, vecs)

    try:
        out = _run(True)
    except Exception:
        # pipeline_mode=pl.Buffered(1) unsupported on this JAX/Mosaic build.
        out = _run(False)

    base = 2 * C + 2 * NT
    return {
        "logits": out[:, :C],
        "probabilities": out[:, C:2 * C],
        "type_logits": out[:, 2 * C:2 * C + NT],
        "type_probabilities": out[:, 2 * C + NT:2 * C + 2 * NT],
        "predicted_class": out[:, base].astype(jnp.int32),
        "confidence": out[:, base + 1],
        "uncertainty": out[:, base + 2],
    }


# --------------------------- parameter creation ------------------------------

def init_params(key, input_dim, hidden_dims, num_classes):
    """Deterministic init mimicking torch.nn.Linear defaults."""
    def linear(k, fan_in, fan_out):
        k1, k2 = jax.random.split(k)
        bound = 1.0 / (fan_in ** 0.5)
        w = jax.random.uniform(k1, (fan_in, fan_out), jnp.float32, -bound, bound)
        b = jax.random.uniform(k2, (1, fan_out), jnp.float32, -bound, bound)
        return w, b

    H1, H2 = hidden_dims
    keys = jax.random.split(key, 6)
    w1, b1 = linear(keys[0], input_dim, H1)
    w2, b2 = linear(keys[1], H1, H2)
    wc, bc = linear(keys[2], H2, num_classes)
    wt, bt = linear(keys[3], H2, 8)
    wq1, bq1 = linear(keys[4], H2, H2 // 2)
    wq2, bq2 = linear(keys[5], H2 // 2, 1)
    return {
        "w1": w1, "b1": b1,
        "g1": jnp.ones((1, H1), jnp.float32), "be1": jnp.zeros((1, H1), jnp.float32),
        "w2": w2, "b2": b2,
        "g2": jnp.ones((1, H2), jnp.float32), "be2": jnp.zeros((1, H2), jnp.float32),
        "wc": wc, "bc": bc,
        "wt": wt, "bt": bt,
        "wq1": wq1, "bq1": bq1,
        "wq2": wq2, "bq2": bq2,
    }


# ------------------------------ pure-JAX reference ---------------------------

def reference_forward(x, p):
    def ln(h, g, b):
        mu = h.mean(-1, keepdims=True)
        var = ((h - mu) ** 2).mean(-1, keepdims=True)
        return (h - mu) / jnp.sqrt(var + 1e-5) * g + b

    h = jnp.maximum(ln(x @ p["w1"] + p["b1"], p["g1"], p["be1"]), 0.0)
    h = jnp.maximum(ln(h @ p["w2"] + p["b2"], p["g2"], p["be2"]), 0.0)
    pooled = h.mean(axis=1)
    logits = pooled @ p["wc"] + p["bc"]
    probs = jax.nn.softmax(logits, axis=-1)
    tlog = pooled @ p["wt"] + p["bt"]
    tprob = jax.nn.softmax(tlog, axis=-1)
    q = jnp.maximum(pooled @ p["wq1"] + p["bq1"], 0.0)
    conf = jax.nn.sigmoid(q @ p["wq2"] + p["bq2"])[:, 0]
    unc = -(probs * jnp.log(probs + 1e-8)).sum(-1)
    return {
        "logits": logits, "probabilities": probs,
        "predicted_class": jnp.argmax(probs, axis=-1).astype(jnp.int32),
        "type_logits": tlog, "type_probabilities": tprob,
        "confidence": conf, "uncertainty": unc,
    }


# ----------------------------------- main ------------------------------------

if __name__ == "__main__":
    B, S, D_IN = 2, 8, 32
    HIDDEN = [64, 32]
    NUM_CLASSES = 16

    key = jax.random.PRNGKey(0)
    kx, kp = jax.random.split(key)
    x = jax.random.normal(kx, (B, S, D_IN), jnp.float32)
    params = init_params(kp, D_IN, HIDDEN, NUM_CLASSES)

    out = entity_classification_head(x, params, NUM_CLASSES)
    out = jax.tree_util.tree_map(jax.block_until_ready, out)

    ref = reference_forward(x, params)
    # bf16 MXU operands -> loosened tolerances vs. the pure-f32 reference.
    for k in ("logits", "probabilities", "type_logits", "type_probabilities",
              "confidence", "uncertainty"):
        assert jnp.allclose(out[k], ref[k], atol=3e-2, rtol=3e-2), f"mismatch in {k}"
    # predicted_class must equal the argmax of the head's own probabilities
    # (the module's definition); exact agreement with the f32 reference is not
    # guaranteed under bf16 when two logits are near-tied.
    assert jnp.array_equal(
        out["predicted_class"],
        jnp.argmax(out["probabilities"], axis=-1).astype(jnp.int32))

    print("KERNEL_OK")
</pallas_src>

<mosaic_0001>
module attributes {stable_mosaic.version = 11 : i64} {
  func.func @entity_head_kernel(%arg0: i32, %arg1: memref<2x8x32xbf16, #tpu.memory_space<vmem>>, %arg2: memref<32x64xbf16, #tpu.memory_space<vmem>>, %arg3: memref<64x32xbf16, #tpu.memory_space<vmem>>, %arg4: memref<32x128xbf16, #tpu.memory_space<vmem>>, %arg5: memref<9x128xf32, #tpu.memory_space<vmem>>, %arg6: memref<2x128xf32, #tpu.memory_space<vmem>>) attributes {dimension_semantics = [#tpu.dimension_semantics<parallel>], iteration_bounds = array<i64: 1>, scalar_prefetch = 0 : i64, scratch_operands = 0 : i64, tpu.core_type = #tpu.core_type<tc>, window_params = [{transform_indices = @transform_0, window_bounds = array<i64: 2, 8, 32>}, {pipeline_mode = #tpu.pipeline_mode<synchronous>, transform_indices = @transform_1, window_bounds = array<i64: 32, 64>}, {pipeline_mode = #tpu.pipeline_mode<synchronous>, transform_indices = @transform_2, window_bounds = array<i64: 64, 32>}, {pipeline_mode = #tpu.pipeline_mode<synchronous>, transform_indices = @transform_3, window_bounds = array<i64: 32, 128>}, {pipeline_mode = #tpu.pipeline_mode<synchronous>, transform_indices = @transform_4, window_bounds = array<i64: 9, 128>}, {transform_indices = @transform_5, window_bounds = array<i64: 2, 128>}]} {
    %c0 = arith.constant 0 : index
    %c0_0 = arith.constant 0 : index
    %0 = vector.load %arg5[%c0, %c0_0] : memref<9x128xf32, #tpu.memory_space<vmem>>, vector<1x64xf32>
    %c1 = arith.constant 1 : index
    %c0_1 = arith.constant 0 : index
    %1 = vector.load %arg5[%c1, %c0_1] : memref<9x128xf32, #tpu.memory_space<vmem>>, vector<1x64xf32>
    %c2 = arith.constant 2 : index
    %c0_2 = arith.constant 0 : index
    %2 = vector.load %arg5[%c2, %c0_2] : memref<9x128xf32, #tpu.memory_space<vmem>>, vector<1x64xf32>
    %c3 = arith.constant 3 : index
    %c0_3 = arith.constant 0 : index
    %3 = vector.load %arg5[%c3, %c0_3] : memref<9x128xf32, #tpu.memory_space<vmem>>, vector<1x32xf32>
    %c4 = arith.constant 4 : index
    %c0_4 = arith.constant 0 : index
    %4 = vector.load %arg5[%c4, %c0_4] : memref<9x128xf32, #tpu.memory_space<vmem>>, vector<1x32xf32>
    %c5 = arith.constant 5 : index
    %c0_5 = arith.constant 0 : index
    %5 = vector.load %arg5[%c5, %c0_5] : memref<9x128xf32, #tpu.memory_space<vmem>>, vector<1x32xf32>
    %c6 = arith.constant 6 : index
    %c0_6 = arith.constant 0 : index
    %6 = vector.load %arg5[%c6, %c0_6] : memref<9x128xf32, #tpu.memory_space<vmem>>, vector<1x128xf32>
    %c7 = arith.constant 7 : index
    %c0_7 = arith.constant 0 : index
    %7 = vector.load %arg5[%c7, %c0_7] : memref<9x128xf32, #tpu.memory_space<vmem>>, vector<1x16xf32>
    %c8 = arith.constant 8 : index
    %c0_8 = arith.constant 0 : index
    %8 = vector.load %arg5[%c8, %c0_8] : memref<9x128xf32, #tpu.memory_space<vmem>>, vector<1x1xf32>
    %c0_9 = arith.constant 0 : index
    %c0_10 = arith.constant 0 : index
    %c0_11 = arith.constant 0 : index
    %9 = vector.load %arg1[%c0_9, %c0_10, %c0_11] : memref<2x8x32xbf16, #tpu.memory_space<vmem>>, vector<2x8x32xbf16>
    %10 = vector.shape_cast %9 : vector<2x8x32xbf16> to vector<16x32xbf16>
    %c0_12 = arith.constant 0 : index
    %c0_13 = arith.constant 0 : index
    %11 = vector.load %arg2[%c0_12, %c0_13] : memref<32x64xbf16, #tpu.memory_space<vmem>>, vector<32x64xbf16>
    %cst = arith.constant dense<0.000000e+00> : vector<16x64xf32>
    %12 = tpu.matmul %10, %11, %cst {dimension_numbers = #tpu.dot_dimension_numbers<[1], [0], [0], [1], [0, 0, 1, 1], [], []>} : vector<16x32xbf16>, vector<32x64xbf16>, vector<16x64xf32> -> vector<16x64xf32>
    %13 = vector.broadcast %0 : vector<1x64xf32> to vector<16x64xf32>
    %14 = arith.addf %12, %13 : vector<16x64xf32>
    %cst_14 = arith.constant dense<0.000000e+00> : vector<16xf32>
    %15 = vector.multi_reduction <add>, %14, %cst_14 [1] : vector<16x64xf32> to vector<16xf32>
    %16 = vector.shape_cast %15 : vector<16xf32> to vector<16x1xf32>
    %cst_15 = arith.constant 6.400000e+01 : f32
    %17 = vector.broadcast %cst_15 : f32 to vector<16x1xf32>
    %18 = arith.divf %16, %17 : vector<16x1xf32>
    %19 = vector.broadcast %18 : vector<16x1xf32> to vector<16x64xf32>
    %20 = arith.subf %14, %19 : vector<16x64xf32>
    %21 = arith.mulf %20, %20 : vector<16x64xf32>
    %cst_16 = arith.constant dense<0.000000e+00> : vector<16xf32>
    %22 = vector.multi_reduction <add>, %21, %cst_16 [1] : vector<16x64xf32> to vector<16xf32>
    %23 = vector.shape_cast %22 : vector<16xf32> to vector<16x1xf32>
    %cst_17 = arith.constant 6.400000e+01 : f32
    %24 = vector.broadcast %cst_17 : f32 to vector<16x1xf32>
    %25 = arith.divf %23, %24 : vector<16x1xf32>
    %26 = vector.broadcast %18 : vector<16x1xf32> to vector<16x64xf32>
    %27 = arith.subf %14, %26 : vector<16x64xf32>
    %cst_18 = arith.constant 9.99999974E-6 : f32
    %28 = vector.broadcast %cst_18 : f32 to vector<16x1xf32>
    %29 = arith.addf %25, %28 : vector<16x1xf32>
    %30 = math.rsqrt %29 : vector<16x1xf32>
    %31 = vector.broadcast %30 : vector<16x1xf32> to vector<16x64xf32>
    %32 = arith.mulf %27, %31 : vector<16x64xf32>
    %33 = vector.broadcast %1 : vector<1x64xf32> to vector<16x64xf32>
    %34 = arith.mulf %32, %33 : vector<16x64xf32>
    %35 = vector.broadcast %2 : vector<1x64xf32> to vector<16x64xf32>
    %36 = arith.addf %34, %35 : vector<16x64xf32>
    %cst_19 = arith.constant 0.000000e+00 : f32
    %37 = vector.broadcast %cst_19 : f32 to vector<16x64xf32>
    %38 = arith.maximumf %36, %37 : vector<16x64xf32>
    %39 = arith.truncf %38 : vector<16x64xf32> to vector<16x64xbf16>
    %c0_20 = arith.constant 0 : index
    %c0_21 = arith.constant 0 : index
    %40 = vector.load %arg3[%c0_20, %c0_21] : memref<64x32xbf16, #tpu.memory_space<vmem>>, vector<64x32xbf16>
    %cst_22 = arith.constant dense<0.000000e+00> : vector<16x32xf32>
    %41 = tpu.matmul %39, %40, %cst_22 {dimension_numbers = #tpu.dot_dimension_numbers<[1], [0], [0], [1], [0, 0, 1, 1], [], []>} : vector<16x64xbf16>, vector<64x32xbf16>, vector<16x32xf32> -> vector<16x32xf32>
    %42 = vector.broadcast %3 : vector<1x32xf32> to vector<16x32xf32>
    %43 = arith.addf %41, %42 : vector<16x32xf32>
    %cst_23 = arith.constant dense<0.000000e+00> : vector<16xf32>
    %44 = vector.multi_reduction <add>, %43, %cst_23 [1] : vector<16x32xf32> to vector<16xf32>
    %45 = vector.shape_cast %44 : vector<16xf32> to vector<16x1xf32>
    %cst_24 = arith.constant 3.200000e+01 : f32
    %46 = vector.broadcast %cst_24 : f32 to vector<16x1xf32>
    %47 = arith.divf %45, %46 : vector<16x1xf32>
    %48 = vector.broadcast %47 : vector<16x1xf32> to vector<16x32xf32>
    %49 = arith.subf %43, %48 : vector<16x32xf32>
    %50 = arith.mulf %49, %49 : vector<16x32xf32>
    %cst_25 = arith.constant dense<0.000000e+00> : vector<16xf32>
    %51 = vector.multi_reduction <add>, %50, %cst_25 [1] : vector<16x32xf32> to vector<16xf32>
    %52 = vector.shape_cast %51 : vector<16xf32> to vector<16x1xf32>
    %cst_26 = arith.constant 3.200000e+01 : f32
    %53 = vector.broadcast %cst_26 : f32 to vector<16x1xf32>
    %54 = arith.divf %52, %53 : vector<16x1xf32>
    %55 = vector.broadcast %47 : vector<16x1xf32> to vector<16x32xf32>
    %56 = arith.subf %43, %55 : vector<16x32xf32>
    %cst_27 = arith.constant 9.99999974E-6 : f32
    %57 = vector.broadcast %cst_27 : f32 to vector<16x1xf32>
    %58 = arith.addf %54, %57 : vector<16x1xf32>
    %59 = math.rsqrt %58 : vector<16x1xf32>
    %60 = vector.broadcast %59 : vector<16x1xf32> to vector<16x32xf32>
    %61 = arith.mulf %56, %60 : vector<16x32xf32>
    %62 = vector.broadcast %4 : vector<1x32xf32> to vector<16x32xf32>
    %63 = arith.mulf %61, %62 : vector<16x32xf32>
    %64 = vector.broadcast %5 : vector<1x32xf32> to vector<16x32xf32>
    %65 = arith.addf %63, %64 : vector<16x32xf32>
    %cst_28 = arith.constant 0.000000e+00 : f32
    %66 = vector.broadcast %cst_28 : f32 to vector<16x32xf32>
    %67 = arith.maximumf %65, %66 : vector<16x32xf32>
    %68 = vector.shape_cast %67 : vector<16x32xf32> to vector<2x8x32xf32>
    %cst_29 = arith.constant dense<0.000000e+00> : vector<2x32xf32>
    %69 = vector.multi_reduction <add>, %68, %cst_29 [1] : vector<2x8x32xf32> to vector<2x32xf32>
    %70 = arith.truncf %69 : vector<2x32xf32> to vector<2x32xbf16>
    %c0_30 = arith.constant 0 : index
    %c0_31 = arith.constant 0 : index
    %71 = vector.load %arg4[%c0_30, %c0_31] : memref<32x128xbf16, #tpu.memory_space<vmem>>, vector<32x128xbf16>
    %cst_32 = arith.constant dense<0.000000e+00> : vector<2x128xf32>
    %72 = tpu.matmul %70, %71, %cst_32 {dimension_numbers = #tpu.dot_dimension_numbers<[1], [0], [0], [1], [0, 0, 1, 1], [], []>} : vector<2x32xbf16>, vector<32x128xbf16>, vector<2x128xf32> -> vector<2x128xf32>
    %73 = vector.broadcast %6 : vector<1x128xf32> to vector<2x128xf32>
    %74 = arith.addf %72, %73 : vector<2x128xf32>
    %75 = vector.extract_strided_slice %74 {offsets = [0, 0], sizes = [2, 16], strides = [1, 1]} : vector<2x128xf32> to vector<2x16xf32>
    %76 = vector.extract_strided_slice %74 {offsets = [0, 16], sizes = [2, 8], strides = [1, 1]} : vector<2x128xf32> to vector<2x8xf32>
    %77 = vector.extract_strided_slice %74 {offsets = [0, 24], sizes = [2, 16], strides = [1, 1]} : vector<2x128xf32> to vector<2x16xf32>
    %cst_33 = arith.constant 0.000000e+00 : f32
    %78 = vector.broadcast %cst_33 : f32 to vector<2x16xf32>
    %79 = arith.maximumf %77, %78 : vector<2x16xf32>
    %cst_34 = arith.constant dense<0xFF800000> : vector<2xf32>
    %80 = vector.multi_reduction <maximumf>, %75, %cst_34 [1] : vector<2x16xf32> to vector<2xf32>
    %81 = vector.shape_cast %80 : vector<2xf32> to vector<2x1xf32>
    %82 = vector.broadcast %81 : vector<2x1xf32> to vector<2x16xf32>
    %83 = arith.subf %75, %82 : vector<2x16xf32>
    %84 = math.exp %83 : vector<2x16xf32>
    %cst_35 = arith.constant dense<0.000000e+00> : vector<2xf32>
    %85 = vector.multi_reduction <add>, %84, %cst_35 [1] : vector<2x16xf32> to vector<2xf32>
    %86 = vector.shape_cast %85 : vector<2xf32> to vector<2x1xf32>
    %87 = tpu.reciprocal %86 {approx = true} : vector<2x1xf32> -> vector<2x1xf32>
    %88 = vector.broadcast %87 : vector<2x1xf32> to vector<2x16xf32>
    %89 = arith.mulf %84, %88 : vector<2x16xf32>
    %cst_36 = arith.constant dense<0xFF800000> : vector<2xf32>
    %90 = vector.multi_reduction <maximumf>, %76, %cst_36 [1] : vector<2x8xf32> to vector<2xf32>
    %91 = vector.shape_cast %90 : vector<2xf32> to vector<2x1xf32>
    %92 = vector.broadcast %91 : vector<2x1xf32> to vector<2x8xf32>
    %93 = arith.subf %76, %92 : vector<2x8xf32>
    %94 = math.exp %93 : vector<2x8xf32>
    %cst_37 = arith.constant dense<0.000000e+00> : vector<2xf32>
    %95 = vector.multi_reduction <add>, %94, %cst_37 [1] : vector<2x8xf32> to vector<2xf32>
    %96 = vector.shape_cast %95 : vector<2xf32> to vector<2x1xf32>
    %97 = tpu.reciprocal %96 {approx = true} : vector<2x1xf32> -> vector<2x1xf32>
    %98 = vector.broadcast %97 : vector<2x1xf32> to vector<2x8xf32>
    %99 = arith.mulf %94, %98 : vector<2x8xf32>
    %100 = tpu.iota {dimensions = array<i32: 1>} : vector<2x16xi32>
    %cst_38 = arith.constant dense<0xFF800000> : vector<2xf32>
    %101 = vector.multi_reduction <maximumf>, %75, %cst_38 [1] : vector<2x16xf32> to vector<2xf32>
    %102 = vector.shape_cast %101 : vector<2xf32> to vector<2x1xf32>
    %103 = vector.broadcast %102 : vector<2x1xf32> to vector<2x16xf32>
    %104 = arith.cmpf oeq, %75, %103 : vector<2x16xf32>
    %c16_i32 = arith.constant 16 : i32
    %105 = vector.broadcast %c16_i32 : i32 to vector<2x16xi32>
    %106 = arith.select %104, %100, %105 : vector<2x16xi1>, vector<2x16xi32>
    %cst_39 = arith.constant dense<2147483647> : vector<2xi32>
    %107 = vector.multi_reduction <minsi>, %106, %cst_39 [1] : vector<2x16xi32> to vector<2xi32>
    %108 = vector.shape_cast %107 : vector<2xi32> to vector<2x1xi32>
    %109 = vector.broadcast %7 : vector<1x16xf32> to vector<2x16xf32>
    %110 = arith.mulf %79, %109 : vector<2x16xf32>
    %cst_40 = arith.constant dense<0.000000e+00> : vector<2xf32>
    %111 = vector.multi_reduction <add>, %110, %cst_40 [1] : vector<2x16xf32> to vector<2xf32>
    %112 = vector.shape_cast %111 : vector<2xf32> to vector<2x1xf32>
    %113 = vector.broadcast %8 : vector<1x1xf32> to vector<2x1xf32>
    %114 = arith.addf %112, %113 : vector<2x1xf32>
    %cst_41 = arith.constant 5.000000e-01 : f32
    %115 = vector.broadcast %cst_41 : f32 to vector<2x1xf32>
    %116 = arith.mulf %115, %114 : vector<2x1xf32>
    %117 = math.tanh %116 : vector<2x1xf32>
    %cst_42 = arith.constant 1.000000e+00 : f32
    %118 = vector.broadcast %cst_42 : f32 to vector<2x1xf32>
    %119 = arith.addf %117, %118 : vector<2x1xf32>
    %cst_43 = arith.constant 5.000000e-01 : f32
    %120 = vector.broadcast %cst_43 : f32 to vector<2x1xf32>
    %121 = arith.mulf %120, %119 : vector<2x1xf32>
    %cst_44 = arith.constant 9.99999993E-9 : f32
    %122 = vector.broadcast %cst_44 : f32 to vector<2x16xf32>
    %123 = arith.addf %89, %122 : vector<2x16xf32>
    %124 = math.log %123 : vector<2x16xf32>
    %125 = arith.mulf %89, %124 : vector<2x16xf32>
    %cst_45 = arith.constant dense<0.000000e+00> : vector<2xf32>
    %126 = vector.multi_reduction <add>, %125, %cst_45 [1] : vector<2x16xf32> to vector<2xf32>
    %127 = vector.shape_cast %126 : vector<2xf32> to vector<2x1xf32>
    %cst_46 = arith.constant 0.000000e+00 : f32
    %128 = vector.broadcast %cst_46 : f32 to vector<2x1xf32>
    %129 = arith.subf %128, %127 : vector<2x1xf32>
    %130 = arith.sitofp %108 : vector<2x1xi32> to vector<2x1xf32>
    %cst_47 = arith.constant 0.000000e+00 : f32
    %131 = vector.broadcast %cst_47 : f32 to vector<2x77xf32>
    %132 = tpu.concatenate %75, %89, %76, %99, %130, %121, %129, %131 in 1 : vector<2x16xf32>, vector<2x16xf32>, vector<2x8xf32>, vector<2x8xf32>, vector<2x1xf32>, vector<2x1xf32>, vector<2x1xf32>, vector<2x77xf32> -> vector<2x128xf32>
    %c0_48 = arith.constant 0 : index
    %c0_49 = arith.constant 0 : index
    %133 = vector.load %arg6[%c0_48, %c0_49] : memref<2x128xf32, #tpu.memory_space<vmem>>, vector<2x128xf32>
    tpu.vector_store %arg6[%c0_48, %c0_49], %132 {strides = array<i32>} : memref<2x128xf32, #tpu.memory_space<vmem>>, vector<2x128xf32>,
    return
  }
  func.func @transform_0(%arg0: i32) -> (i32, i32, i32) {
    %c0_i32 = arith.constant 0 : i32
    %c0_i32_0 = arith.constant 0 : i32
    %c0_i32_1 = arith.constant 0 : i32
    return %arg0, %c0_i32, %c0_i32_0 : i32, i32, i32
  }
  func.func @transform_1(%arg0: i32) -> (i32, i32) {
    %c0_i32 = arith.constant 0 : i32
    %c0_i32_0 = arith.constant 0 : i32
    %c0_i32_1 = arith.constant 0 : i32
    return %c0_i32, %c0_i32_0 : i32, i32
  }
  func.func @transform_2(%arg0: i32) -> (i32, i32) {
    %c0_i32 = arith.constant 0 : i32
    %c0_i32_0 = arith.constant 0 : i32
    %c0_i32_1 = arith.constant 0 : i32
    return %c0_i32, %c0_i32_0 : i32, i32
  }
  func.func @transform_3(%arg0: i32) -> (i32, i32) {
    %c0_i32 = arith.constant 0 : i32
    %c0_i32_0 = arith.constant 0 : i32
    %c0_i32_1 = arith.constant 0 : i32
    return %c0_i32, %c0_i32_0 : i32, i32
  }
  func.func @transform_4(%arg0: i32) -> (i32, i32) {
    %c0_i32 = arith.constant 0 : i32
    %c0_i32_0 = arith.constant 0 : i32
    %c0_i32_1 = arith.constant 0 : i32
    return %c0_i32, %c0_i32_0 : i32, i32
  }
  func.func @transform_5(%arg0: i32) -> (i32, i32) {
    %c0_i32 = arith.constant 0 : i32
    %c0_i32_0 = arith.constant 0 : i32
    return %arg0, %c0_i32 : i32, i32
  }
}

module attributes {stable_mosaic.version = 11 : i64} {
  func.func @entity_head_kernel(%arg0: i32, %arg1: memref<2x8x32xbf16, #tpu.memory_space<vmem>>, %arg2: memref<32x64xbf16, #tpu.memory_space<vmem>>, %arg3: memref<64x32xbf16, #tpu.memory_space<vmem>>, %arg4: memref<32x128xbf16, #tpu.memory_space<vmem>>, %arg5: memref<9x128xf32, #tpu.memory_space<vmem>>, %arg6: memref<2x128xf32, #tpu.memory_space<vmem>>) attributes {dimension_semantics = [#tpu.dimension_semantics<parallel>], iteration_bounds = array<i64: 1>, scalar_prefetch = 0 : i64, scratch_operands = 0 : i64, tpu.core_type = #tpu.core_type<tc>, window_params = [{transform_indices = @transform_0, window_bounds = array<i64: 2, 8, 32>}, {pipeline_mode = #tpu.pipeline_mode<synchronous>, transform_indices = @transform_1, window_bounds = array<i64: 32, 64>}, {pipeline_mode = #tpu.pipeline_mode<synchronous>, transform_indices = @transform_2, window_bounds = array<i64: 64, 32>}, {pipeline_mode = #tpu.pipeline_mode<synchronous>, transform_indices = @transform_3, window_bounds = array<i64: 32, 128>}, {pipeline_mode = #tpu.pipeline_mode<synchronous>, transform_indices = @transform_4, window_bounds = array<i64: 9, 128>}, {transform_indices = @transform_5, window_bounds = array<i64: 2, 128>}]} {
    %c0 = arith.constant 0 : index
    %c0_0 = arith.constant 0 : index
    %0 = vector.load %arg5[%c0, %c0_0] : memref<9x128xf32, #tpu.memory_space<vmem>>, vector<1x64xf32>
    %c1 = arith.constant 1 : index
    %c0_1 = arith.constant 0 : index
    %1 = vector.load %arg5[%c1, %c0_1] : memref<9x128xf32, #tpu.memory_space<vmem>>, vector<1x64xf32>
    %c2 = arith.constant 2 : index
    %c0_2 = arith.constant 0 : index
    %2 = vector.load %arg5[%c2, %c0_2] : memref<9x128xf32, #tpu.memory_space<vmem>>, vector<1x64xf32>
    %c3 = arith.constant 3 : index
    %c0_3 = arith.constant 0 : index
    %3 = vector.load %arg5[%c3, %c0_3] : memref<9x128xf32, #tpu.memory_space<vmem>>, vector<1x32xf32>
    %c4 = arith.constant 4 : index
    %c0_4 = arith.constant 0 : index
    %4 = vector.load %arg5[%c4, %c0_4] : memref<9x128xf32, #tpu.memory_space<vmem>>, vector<1x32xf32>
    %c5 = arith.constant 5 : index
    %c0_5 = arith.constant 0 : index
    %5 = vector.load %arg5[%c5, %c0_5] : memref<9x128xf32, #tpu.memory_space<vmem>>, vector<1x32xf32>
    %c6 = arith.constant 6 : index
    %c0_6 = arith.constant 0 : index
    %6 = vector.load %arg5[%c6, %c0_6] : memref<9x128xf32, #tpu.memory_space<vmem>>, vector<1x128xf32>
    %c7 = arith.constant 7 : index
    %c0_7 = arith.constant 0 : index
    %7 = vector.load %arg5[%c7, %c0_7] : memref<9x128xf32, #tpu.memory_space<vmem>>, vector<1x16xf32>
    %c8 = arith.constant 8 : index
    %c0_8 = arith.constant 0 : index
    %8 = vector.load %arg5[%c8, %c0_8] : memref<9x128xf32, #tpu.memory_space<vmem>>, vector<1x1xf32>
    %c0_9 = arith.constant 0 : index
    %c0_10 = arith.constant 0 : index
    %c0_11 = arith.constant 0 : index
    %9 = vector.load %arg1[%c0_9, %c0_10, %c0_11] : memref<2x8x32xbf16, #tpu.memory_space<vmem>>, vector<2x8x32xbf16>
    %10 = vector.shape_cast %9 : vector<2x8x32xbf16> to vector<16x32xbf16>
    %c0_12 = arith.constant 0 : index
    %c0_13 = arith.constant 0 : index
    %11 = vector.load %arg2[%c0_12, %c0_13] : memref<32x64xbf16, #tpu.memory_space<vmem>>, vector<32x64xbf16>
    %cst = arith.constant dense<0.000000e+00> : vector<16x64xf32>
    %12 = tpu.matmul %10, %11, %cst {dimension_numbers = #tpu.dot_dimension_numbers<[1], [0], [0], [1], [0, 0, 1, 1], [], []>} : vector<16x32xbf16>, vector<32x64xbf16>, vector<16x64xf32> -> vector<16x64xf32>
    %13 = vector.broadcast %0 : vector<1x64xf32> to vector<16x64xf32>
    %14 = arith.addf %12, %13 : vector<16x64xf32>
    %cst_14 = arith.constant dense<0.000000e+00> : vector<16xf32>
    %15 = vector.multi_reduction <add>, %14, %cst_14 [1] : vector<16x64xf32> to vector<16xf32>
    %16 = vector.shape_cast %15 : vector<16xf32> to vector<16x1xf32>
    %cst_15 = arith.constant 6.400000e+01 : f32
    %17 = vector.broadcast %cst_15 : f32 to vector<16x1xf32>
    %18 = arith.divf %16, %17 : vector<16x1xf32>
    %19 = vector.broadcast %18 : vector<16x1xf32> to vector<16x64xf32>
    %20 = arith.subf %14, %19 : vector<16x64xf32>
    %21 = arith.mulf %20, %20 : vector<16x64xf32>
    %cst_16 = arith.constant dense<0.000000e+00> : vector<16xf32>
    %22 = vector.multi_reduction <add>, %21, %cst_16 [1] : vector<16x64xf32> to vector<16xf32>
    %23 = vector.shape_cast %22 : vector<16xf32> to vector<16x1xf32>
    %cst_17 = arith.constant 6.400000e+01 : f32
    %24 = vector.broadcast %cst_17 : f32 to vector<16x1xf32>
    %25 = arith.divf %23, %24 : vector<16x1xf32>
    %26 = vector.broadcast %18 : vector<16x1xf32> to vector<16x64xf32>
    %27 = arith.subf %14, %26 : vector<16x64xf32>
    %cst_18 = arith.constant 9.99999974E-6 : f32
    %28 = vector.broadcast %cst_18 : f32 to vector<16x1xf32>
    %29 = arith.addf %25, %28 : vector<16x1xf32>
    %30 = math.rsqrt %29 : vector<16x1xf32>
    %31 = vector.broadcast %30 : vector<16x1xf32> to vector<16x64xf32>
    %32 = arith.mulf %27, %31 : vector<16x64xf32>
    %33 = vector.broadcast %1 : vector<1x64xf32> to vector<16x64xf32>
    %34 = arith.mulf %32, %33 : vector<16x64xf32>
    %35 = vector.broadcast %2 : vector<1x64xf32> to vector<16x64xf32>
    %36 = arith.addf %34, %35 : vector<16x64xf32>
    %cst_19 = arith.constant 0.000000e+00 : f32
    %37 = vector.broadcast %cst_19 : f32 to vector<16x64xf32>
    %38 = arith.maximumf %36, %37 : vector<16x64xf32>
    %39 = arith.truncf %38 : vector<16x64xf32> to vector<16x64xbf16>
    %c0_20 = arith.constant 0 : index
    %c0_21 = arith.constant 0 : index
    %40 = vector.load %arg3[%c0_20, %c0_21] : memref<64x32xbf16, #tpu.memory_space<vmem>>, vector<64x32xbf16>
    %cst_22 = arith.constant dense<0.000000e+00> : vector<16x32xf32>
    %41 = tpu.matmul %39, %40, %cst_22 {dimension_numbers = #tpu.dot_dimension_numbers<[1], [0], [0], [1], [0, 0, 1, 1], [], []>} : vector<16x64xbf16>, vector<64x32xbf16>, vector<16x32xf32> -> vector<16x32xf32>
    %42 = vector.broadcast %3 : vector<1x32xf32> to vector<16x32xf32>
    %43 = arith.addf %41, %42 : vector<16x32xf32>
    %cst_23 = arith.constant dense<0.000000e+00> : vector<16xf32>
    %44 = vector.multi_reduction <add>, %43, %cst_23 [1] : vector<16x32xf32> to vector<16xf32>
    %45 = vector.shape_cast %44 : vector<16xf32> to vector<16x1xf32>
    %cst_24 = arith.constant 3.200000e+01 : f32
    %46 = vector.broadcast %cst_24 : f32 to vector<16x1xf32>
    %47 = arith.divf %45, %46 : vector<16x1xf32>
    %48 = vector.broadcast %47 : vector<16x1xf32> to vector<16x32xf32>
    %49 = arith.subf %43, %48 : vector<16x32xf32>
    %50 = arith.mulf %49, %49 : vector<16x32xf32>
    %cst_25 = arith.constant dense<0.000000e+00> : vector<16xf32>
    %51 = vector.multi_reduction <add>, %50, %cst_25 [1] : vector<16x32xf32> to vector<16xf32>
    %52 = vector.shape_cast %51 : vector<16xf32> to vector<16x1xf32>
    %cst_26 = arith.constant 3.200000e+01 : f32
    %53 = vector.broadcast %cst_26 : f32 to vector<16x1xf32>
    %54 = arith.divf %52, %53 : vector<16x1xf32>
    %55 = vector.broadcast %47 : vector<16x1xf32> to vector<16x32xf32>
    %56 = arith.subf %43, %55 : vector<16x32xf32>
    %cst_27 = arith.constant 9.99999974E-6 : f32
    %57 = vector.broadcast %cst_27 : f32 to vector<16x1xf32>
    %58 = arith.addf %54, %57 : vector<16x1xf32>
    %59 = math.rsqrt %58 : vector<16x1xf32>
    %60 = vector.broadcast %59 : vector<16x1xf32> to vector<16x32xf32>
    %61 = arith.mulf %56, %60 : vector<16x32xf32>
    %62 = vector.broadcast %4 : vector<1x32xf32> to vector<16x32xf32>
    %63 = arith.mulf %61, %62 : vector<16x32xf32>
    %64 = vector.broadcast %5 : vector<1x32xf32> to vector<16x32xf32>
    %65 = arith.addf %63, %64 : vector<16x32xf32>
    %cst_28 = arith.constant 0.000000e+00 : f32
    %66 = vector.broadcast %cst_28 : f32 to vector<16x32xf32>
    %67 = arith.maximumf %65, %66 : vector<16x32xf32>
    %68 = vector.shape_cast %67 : vector<16x32xf32> to vector<2x8x32xf32>
    %cst_29 = arith.constant dense<0.000000e+00> : vector<2x32xf32>
    %69 = vector.multi_reduction <add>, %68, %cst_29 [1] : vector<2x8x32xf32> to vector<2x32xf32>
    %70 = arith.truncf %69 : vector<2x32xf32> to vector<2x32xbf16>
    %c0_30 = arith.constant 0 : index
    %c0_31 = arith.constant 0 : index
    %71 = vector.load %arg4[%c0_30, %c0_31] : memref<32x128xbf16, #tpu.memory_space<vmem>>, vector<32x128xbf16>
    %cst_32 = arith.constant dense<0.000000e+00> : vector<2x128xf32>
    %72 = tpu.matmul %70, %71, %cst_32 {dimension_numbers = #tpu.dot_dimension_numbers<[1], [0], [0], [1], [0, 0, 1, 1], [], []>} : vector<2x32xbf16>, vector<32x128xbf16>, vector<2x128xf32> -> vector<2x128xf32>
    %73 = vector.broadcast %6 : vector<1x128xf32> to vector<2x128xf32>
    %74 = arith.addf %72, %73 : vector<2x128xf32>
    %75 = vector.extract_strided_slice %74 {offsets = [0, 0], sizes = [2, 16], strides = [1, 1]} : vector<2x128xf32> to vector<2x16xf32>
    %76 = vector.extract_strided_slice %74 {offsets = [0, 16], sizes = [2, 8], strides = [1, 1]} : vector<2x128xf32> to vector<2x8xf32>
    %77 = vector.extract_strided_slice %74 {offsets = [0, 24], sizes = [2, 16], strides = [1, 1]} : vector<2x128xf32> to vector<2x16xf32>
    %cst_33 = arith.constant 0.000000e+00 : f32
    %78 = vector.broadcast %cst_33 : f32 to vector<2x16xf32>
    %79 = arith.maximumf %77, %78 : vector<2x16xf32>
    %cst_34 = arith.constant dense<0xFF800000> : vector<2xf32>
    %80 = vector.multi_reduction <maximumf>, %75, %cst_34 [1] : vector<2x16xf32> to vector<2xf32>
    %81 = vector.shape_cast %80 : vector<2xf32> to vector<2x1xf32>
    %82 = vector.broadcast %81 : vector<2x1xf32> to vector<2x16xf32>
    %83 = arith.subf %75, %82 : vector<2x16xf32>
    %84 = math.exp %83 : vector<2x16xf32>
    %cst_35 = arith.constant dense<0.000000e+00> : vector<2xf32>
    %85 = vector.multi_reduction <add>, %84, %cst_35 [1] : vector<2x16xf32> to vector<2xf32>
    %86 = vector.shape_cast %85 : vector<2xf32> to vector<2x1xf32>
    %87 = tpu.reciprocal %86 {approx = true} : vector<2x1xf32> -> vector<2x1xf32>
    %88 = vector.broadcast %87 : vector<2x1xf32> to vector<2x16xf32>
    %89 = arith.mulf %84, %88 : vector<2x16xf32>
    %cst_36 = arith.constant dense<0xFF800000> : vector<2xf32>
    %90 = vector.multi_reduction <maximumf>, %76, %cst_36 [1] : vector<2x8xf32> to vector<2xf32>
    %91 = vector.shape_cast %90 : vector<2xf32> to vector<2x1xf32>
    %92 = vector.broadcast %91 : vector<2x1xf32> to vector<2x8xf32>
    %93 = arith.subf %76, %92 : vector<2x8xf32>
    %94 = math.exp %93 : vector<2x8xf32>
    %cst_37 = arith.constant dense<0.000000e+00> : vector<2xf32>
    %95 = vector.multi_reduction <add>, %94, %cst_37 [1] : vector<2x8xf32> to vector<2xf32>
    %96 = vector.shape_cast %95 : vector<2xf32> to vector<2x1xf32>
    %97 = tpu.reciprocal %96 {approx = true} : vector<2x1xf32> -> vector<2x1xf32>
    %98 = vector.broadcast %97 : vector<2x1xf32> to vector<2x8xf32>
    %99 = arith.mulf %94, %98 : vector<2x8xf32>
    %100 = tpu.iota {dimensions = array<i32: 1>} : vector<2x16xi32>
    %cst_38 = arith.constant dense<0xFF800000> : vector<2xf32>
    %101 = vector.multi_reduction <maximumf>, %75, %cst_38 [1] : vector<2x16xf32> to vector<2xf32>
    %102 = vector.shape_cast %101 : vector<2xf32> to vector<2x1xf32>
    %103 = vector.broadcast %102 : vector<2x1xf32> to vector<2x16xf32>
    %104 = arith.cmpf oeq, %75, %103 : vector<2x16xf32>
    %c16_i32 = arith.constant 16 : i32
    %105 = vector.broadcast %c16_i32 : i32 to vector<2x16xi32>
    %106 = arith.select %104, %100, %105 : vector<2x16xi1>, vector<2x16xi32>
    %cst_39 = arith.constant dense<2147483647> : vector<2xi32>
    %107 = vector.multi_reduction <minsi>, %106, %cst_39 [1] : vector<2x16xi32> to vector<2xi32>
    %108 = vector.shape_cast %107 : vector<2xi32> to vector<2x1xi32>
    %109 = vector.broadcast %7 : vector<1x16xf32> to vector<2x16xf32>
    %110 = arith.mulf %79, %109 : vector<2x16xf32>
    %cst_40 = arith.constant dense<0.000000e+00> : vector<2xf32>
    %111 = vector.multi_reduction <add>, %110, %cst_40 [1] : vector<2x16xf32> to vector<2xf32>
    %112 = vector.shape_cast %111 : vector<2xf32> to vector<2x1xf32>
    %113 = vector.broadcast %8 : vector<1x1xf32> to vector<2x1xf32>
    %114 = arith.addf %112, %113 : vector<2x1xf32>
    %cst_41 = arith.constant 5.000000e-01 : f32
    %115 = vector.broadcast %cst_41 : f32 to vector<2x1xf32>
    %116 = arith.mulf %115, %114 : vector<2x1xf32>
    %117 = math.tanh %116 : vector<2x1xf32>
    %cst_42 = arith.constant 1.000000e+00 : f32
    %118 = vector.broadcast %cst_42 : f32 to vector<2x1xf32>
    %119 = arith.addf %117, %118 : vector<2x1xf32>
    %cst_43 = arith.constant 5.000000e-01 : f32
    %120 = vector.broadcast %cst_43 : f32 to vector<2x1xf32>
    %121 = arith.mulf %120, %119 : vector<2x1xf32>
    %cst_44 = arith.constant 9.99999993E-9 : f32
    %122 = vector.broadcast %cst_44 : f32 to vector<2x16xf32>
    %123 = arith.addf %89, %122 : vector<2x16xf32>
    %124 = math.log %123 : vector<2x16xf32>
    %125 = arith.mulf %89, %124 : vector<2x16xf32>
    %cst_45 = arith.constant dense<0.000000e+00> : vector<2xf32>
    %126 = vector.multi_reduction <add>, %125, %cst_45 [1] : vector<2x16xf32> to vector<2xf32>
    %127 = vector.shape_cast %126 : vector<2xf32> to vector<2x1xf32>
    %cst_46 = arith.constant 0.000000e+00 : f32
    %128 = vector.broadcast %cst_46 : f32 to vector<2x1xf32>
    %129 = arith.subf %128, %127 : vector<2x1xf32>
    %130 = arith.sitofp %108 : vector<2x1xi32> to vector<2x1xf32>
    %cst_47 = arith.constant 0.000000e+00 : f32
    %131 = vector.broadcast %cst_47 : f32 to vector<2x77xf32>
    %132 = tpu.concatenate %75, %89, %76, %99, %130, %121, %129, %131 in 1 : vector<2x16xf32>, vector<2x16xf32>, vector<2x8xf32>, vector<2x8xf32>, vector<2x1xf32>, vector<2x1xf32>, vector<2x1xf32>, vector<2x77xf32> -> vector<2x128xf32>
    %c0_48 = arith.constant 0 : index
    %c0_49 = arith.constant 0 : index
    %133 = vector.load %arg6[%c0_48, %c0_49] : memref<2x128xf32, #tpu.memory_space<vmem>>, vector<2x128xf32>
    tpu.vector_store %arg6[%c0_48, %c0_49], %132 {strides = array<i32>} : memref<2x128xf32, #tpu.memory_space<vmem>>, vector<2x128xf32>,
    return
  }
  func.func @transform_0(%arg0: i32) -> (i32, i32, i32) {
    %c0_i32 = arith.constant 0 : i32
    %c0_i32_0 = arith.constant 0 : i32
    %c0_i32_1 = arith.constant 0 : i32
    return %arg0, %c0_i32, %c0_i32_0 : i32, i32, i32
  }
  func.func @transform_1(%arg0: i32) -> (i32, i32) {
    %c0_i32 = arith.constant 0 : i32
    %c0_i32_0 = arith.constant 0 : i32
    %c0_i32_1 = arith.constant 0 : i32
    return %c0_i32, %c0_i32_0 : i32, i32
  }
  func.func @transform_2(%arg0: i32) -> (i32, i32) {
    %c0_i32 = arith.constant 0 : i32
    %c0_i32_0 = arith.constant 0 : i32
    %c0_i32_1 = arith.constant 0 : i32
    return %c0_i32, %c0_i32_0 : i32, i32
  }
  func.func @transform_3(%arg0: i32) -> (i32, i32) {
    %c0_i32 = arith.constant 0 : i32
    %c0_i32_0 = arith.constant 0 : i32
    %c0_i32_1 = arith.constant 0 : i32
    return %c0_i32, %c0_i32_0 : i32, i32
  }
  func.func @transform_4(%arg0: i32) -> (i32, i32) {
    %c0_i32 = arith.constant 0 : i32
    %c0_i32_0 = arith.constant 0 : i32
    %c0_i32_1 = arith.constant 0 : i32
    return %c0_i32, %c0_i32_0 : i32, i32
  }
  func.func @transform_5(%arg0: i32) -> (i32, i32) {
    %c0_i32 = arith.constant 0 : i32
    %c0_i32_0 = arith.constant 0 : i32
    return %arg0, %c0_i32 : i32, i32
  }
}

</mosaic_0001>

<bundles_post_ra>
// kernel: tpu_custom_call.1
= control target key start
LH: loop header
LB: loop body
LE: loop exit
PB: predicated region body
PF: predicated region fallthrough
CT: control target
= control target key end

     0   :  { %10 = vsyncpa [#allocation3], 0  ;;  %s801_s0 = inlined_call_operand.hbm [shape: bf16[2,8,32], index: 0, kind: input, shape index: {}]   ;;  %s802_s1 = inlined_call_operand.vmem [shape: bf16[32,64], index: 1, kind: input, shape index: {}]   ;;  %s803_s2 = inlined_call_operand.vmem [shape: bf16[64,32], index: 2, kind: input, shape index: {}]   ;;  %s804_s3 = inlined_call_operand.vmem [shape: bf16[32,128], index: 3, kind: input, shape index: {}]   ;;  %s805_s4 = inlined_call_operand.vmem [shape: f32[9,128], index: 4, kind: input, shape index: {}]   ;;  %s806_s5 = inlined_call_operand.hbm [shape: f32[2,128], index: 5, kind: output, shape index: {}]  }
   0x1   :  { %11 = vsyncpa [#allocation4], 0  ;;  %s643_s18 = smov [#allocation2]   ;;  %s595_s22 = scalar_lea.hbm %s801_s0, 128 }
   0x2   :  { %s17_s19 = sshll.u32 %s643_s18, 4  ;;  %p596_p0 = scmp.ne.s32.totalorder %s801_s0, %s595_s22  ;;  %s18_s19 = int_to_ptr.vmem [resolvable:$true] %s17_s19 }
   0x3   :  { %p599_p1 = scmp.lt.u32.totalorder %s595_s22, %s801_s0 }
   0x5   :  { %p601_p2 = pnand %p599_p1, %p596_p0 }
   0x7   :  { %604 = shalt.err (!%p601_p2)
}
   0x8   :  { %s605_s27 = scalar_lea.vmem %s18_s19, 128  ;;  %p610_p4 = scmp.lt.s32.totalorder %s18_s19, %s18_s19 }
   0x9   :  { %p606_p3 = scmp.ne.s32.totalorder %s18_s19, %s605_s27  ;;  %p611_p5 = scmp.lt.s32.totalorder %s605_s27, %s605_s27 }
   0xb   :  { %p612_p6 = por %p611_p5, %p610_p4 }
   0xd   :  { %p613_p7 = pnand %p612_p6, %p606_p3 }
   0xf   :  { %616 = shalt.err (!%p613_p7)
}
  0x10   :  { %s644_s28 = smov 64   ;;  %s645_s29 = smov 4  }
  0x11   :  { %23 = dma.hbm_to_vmem [thread:$0]  %s801_s0, 128, %s18_s19, [#allocation3], %s644_s28, %s644_s28, %s645_s29  }
  0x12   :  { %639 = dma.done.wait [#allocation3], 128  }
  0x13   :  { %640 = vsyncadd [#allocation3], 4294967168  ;;  %v646_v0 = vmov 0.0   ;;  %vm647_vm0 = vmmov 0   ;;  %v566_v1 = vld [vmem:[%s802_s1] sm:$0xff]   ;;  %v567_v2 = vld [vmem:[%s802_s1 + $0x8] sm:$0xff]  }
  0x14   :  { %527 = vmatprep.subr.bf16.mxu0 %v646_v0  ;;  %531 = vmatprep.mubr.msk.bf16.mxu0 %vm647_vm0, %v646_v0  ;;  %v568_v3 = vld [vmem:[#allocation2] sm:$0xff]   ;;  %vm72_vm1 = vcmask 261120   ;;  %vm117_vm2 = vcmask 523264   ;;  %v570_v24 = vld [vmem:[%s803_s2 + $0x8] sm:$0xff]   ;;  %v571_v25 = vld [vmem:[%s803_s2 + $0x10] sm:$0xff]   ;;  %s648_s30 = smov 24  }
  0x15   :  { %535 = vmatprep.subr.bf16.mxu1 %v646_v0  ;;  %543 = vmatprep.mubr.msk.bf16.mxu1 %vm647_vm0, %v646_v0  ;;  %v495_v4 = vld [vmem:[%s805_s4] ss:$0 sm:$0xff]  ;;  %v572_v26 = vld [vmem:[%s803_s2 + $0x18] sm:$0xff]   ;;  %v500_v34 = vld [vmem:[%s805_s4 + $0x1] ss:$0 sm:$0xff]  ;;  %vm309_vm3 = vcmask 1041409  }
  0x16   :  { %528 = vmatpush3.bf16.msra.mxu0 %v566_v1  ;;  %v569_v23 = vld [vmem:[%s803_s2] sm:$0xff]   ;;  %vm380_vm4 = vcmask 189568   ;;  %vm368_vm5 = vcmask 123904   ;;  %s649_s0 = smov 104   ;;  %s650_s11 = smov 112   ;;  %vm391_vm7 = vcmask 58368  }
  0x17   :  { %529 = vmatprep.subr.bf16.mxu0 %v646_v0  ;;  %536 = vmatpush3.bf16.msra.mxu1 %v569_v23  ;;  %v501_v38 = vld [vmem:[%s805_s4 + $0x2] ss:$0 sm:$0xff]  ;;  %v502_v46 = vld [vmem:[%s805_s4 + $0x3] ss:$0 sm:$0xff]  ;;  %s651_s1 = smov 16   ;;  %s652_s14 = smov 49  }
  0x18   :  { %537 = vmatprep.subr.bf16.mxu1 %v646_v0  ;;  %vm466_vm9 = vcmask 130048   ;;  %vm469_vm10 = vcmask 326656   ;;  %vm471_vm11 = vcmask 392192   ;;  %vm473_vm12 = vcmask 400384  }
  0x19   :  { %vm475_vm13 = vcmask 408576   ;;  %vm477_vm14 = vcmask 416768  }
  0x1a   :  { %530 = vmatpush3.bf16.msra.mxu0 %v567_v2  ;;  %v573_v2 = vld [vmem:[%s804_s3] sm:$0xff]  }
  0x1b   :  { %547 = vmatprep.subr.bf16.mxu0 %v646_v0  ;;  %538 = vmatpush3.bf16.msra.mxu1 %v570_v24 }
  0x1c   :  { %539 = vmatprep.subr.bf16.mxu1 %v646_v0 }
  0x1d   :  { %532 = vmatmul.mubr.msk.bf16.vlgmr.msra.gmra.mrb[0].mxu0 %vm72_vm1, %v568_v3  ;;  %v574_v3 = vld [vmem:[%s804_s3 + $0x8] sm:$0xff]  }
  0x1e   :  { %551 = vmatprep.mubr.msk.bf16.mxu0 %vm647_vm0, %v646_v0  ;;  %548 = vmatpush3.bf16.msra.mxu0 %v573_v2 }
  0x1f   :  { %540 = vmatpush3.bf16.msra.mxu1 %v571_v25  ;;  %549 = vmatprep.subr.bf16.mxu0 %v646_v0 }
  0x20   :  { %541 = vmatprep.subr.bf16.mxu1 %v646_v0  ;;  %v508_v0 = vld [vmem:[%s805_s4 + $0x4] ss:$0 sm:$0xff] }
  0x22   :  { %550 = vmatpush3.bf16.msra.mxu0 %v574_v3 }
  0x23   :  { %542 = vmatpush3.bf16.msra.mxu1 %v572_v26 }
  0xf0   :  { %v110_v5 = vpop.f32.mrb[0].mxu0 }
  0xf1   :  { %v111_v6 = vadd.f32 %v495_v4, %v110_v5  ;;  %v533_v7 = vpop.f32.mrb[1].mxu0 }
  0xf2   :  { %v113_v8 = vpop.f32.mrb[2].mxu0 }
  0xf3   :  { %v114_v9 = vadd.f32 %v495_v4, %v113_v8  ;;  %v534_v10 = vpop.f32.mrb[3].mxu0  ;;  %v118_v11 = vsel %vm117_vm2, %v111_v6, 0.0  ;;  %v514_v4 = vld [vmem:[%s805_s4 + $0x7] ss:$0 sm:$0xff] }
  0xf4   :  { %119 = vadd.xlane.f32.xlu0 %v118_v11 }
  0xf5   :  { %v121_v12 = vsel %vm117_vm2, %v114_v9, 0.0 }
  0xf8   :  { %122 = vadd.xlane.f32.xlu0 %v121_v12 }
 0x181   :  { %v120_v13 = vpop.xlane.xlu0 %119 }
 0x182   :  { %v125_v14 = vmul.f32 0.015625, %v120_v13 }
 0x184   :  { %v127_v15 = vsub.f32 %v111_v6, %v125_v14  ;;  %v509_v14 = vld [vmem:[%s805_s4 + $0x5] ss:$0 sm:$0xff] }
 0x185   :  { %v123_v16 = vpop.xlane.xlu0 %122 }
 0x186   :  { %v126_v17 = vmul.f32 0.015625, %v123_v16  ;;  %v129_v18 = vmul.f32 %v127_v15, %v127_v15 }
 0x188   :  { %v128_v19 = vsub.f32 %v114_v9, %v126_v17  ;;  %v131_v20 = vsel %vm117_vm2, %v129_v18, 0.0 }
 0x189   :  { %132 = vadd.xlane.f32.xlu1 %v131_v20 }
 0x18a   :  { %v130_v21 = vmul.f32 %v128_v19, %v128_v19 }
 0x18c   :  { %v134_v22 = vsel %vm117_vm2, %v130_v21, 0.0 }
 0x18d   :  { %135 = vadd.xlane.f32.xlu1 %v134_v22 }
 0x216   :  { %v133_v27 = vpop.xlane.xlu1 %132 }
 0x217   :  { %v137_v28 = vmul.f32 0.015625, %v133_v27 }
 0x219   :  { %v139_v29 = vadd.f32 1e-05, %v137_v28 }
 0x21a   :  { %v136_v30 = vpop.xlane.xlu1 %135 }
 0x21b   :  { %575 = vrsqrt.f32 %v139_v29  ;;  %v138_v31 = vmul.f32 0.015625, %v136_v30 }
 0x21d   :  { %v140_v32 = vadd.f32 1e-05, %v138_v31 }
 0x21f   :  { %577 = vrsqrt.f32 %v140_v32 }
 0x225   :  { %v576_v33 = vpop.eup %575 }
 0x226   :  { %v143_v35 = vmul.f32 %v576_v33, %v127_v15 }
 0x228   :  { %v149_v36 = vmul.f32 %v500_v34, %v143_v35 }
 0x229   :  { %v578_v37 = vpop.eup %577 }
 0x22a   :  { %v144_v39 = vmul.f32 %v578_v37, %v128_v19  ;;  %v155_v41 = vadd.f32 %v501_v38, %v149_v36 }
 0x22c   :  { %v150_v40 = vmul.f32 %v500_v34, %v144_v39  ;;  %v157_v43 = vmax.f32 %v155_v41, 0.0 }
 0x22e   :  { %v156_v42 = vadd.f32 %v501_v38, %v150_v40 }
 0x230   :  { %v158_v44 = vmax.f32 %v156_v42, 0.0  ;;  %v510_v42 = vld [vmem:[%s805_s4 + $0x6] ss:$0 sm:$0xff] }
 0x232   :  { %v159_v45 = vpack.c.bf16 %v158_v44, %v157_v43 }
 0x234   :  { %544 = vmatmul.mubr.msk.bf16.vlgmr.msra.gmra.mrb[0].mxu1 %vm117_vm2, %v159_v45 }
 0x307   :  { %v233_v47 = vpop.f32.mrb[0].mxu1 }
 0x308   :  { %v234_v48 = vadd.f32 %v502_v46, %v233_v47  ;;  %v545_v49 = vpop.f32.mrb[1].mxu1 }
 0x309   :  { %v236_v50 = vpop.f32.mrb[2].mxu1 }
 0x30a   :  { %v237_v51 = vadd.f32 %v502_v46, %v236_v50  ;;  %v546_v52 = vpop.f32.mrb[3].mxu1  ;;  %v240_v53 = vsel %vm72_vm1, %v234_v48, 0.0 }
 0x30b   :  { %241 = vadd.xlane.f32.xlu0 %v240_v53  ;;  %v397_v53 = vlaneseq }
 0x30c   :  { %v243_v54 = vsel %vm72_vm1, %v237_v51, 0.0 }
 0x30d   :  { %244 = vadd.xlane.f32.xlu1 %v243_v54 }
 0x398   :  { %v242_v55 = vpop.xlane.xlu0 %241 }
 0x399   :  { %v247_v56 = vmul.f32 0.03125, %v242_v55 }
 0x39a   :  { %v245_v57 = vpop.xlane.xlu1 %244 }
 0x39b   :  { %v249_v58 = vsub.f32 %v234_v48, %v247_v56  ;;  %v248_v59 = vmul.f32 0.03125, %v245_v57  ;;  %v398_v56 = vand.u32 127, %v397_v53 }
 0x39d   :  { %v250_v60 = vsub.f32 %v237_v51, %v248_v59  ;;  %v251_v61 = vmul.f32 %v249_v58, %v249_v58 }
 0x39f   :  { %v253_v62 = vsel %vm72_vm1, %v251_v61, 0.0  ;;  %v252_v63 = vmul.f32 %v250_v60, %v250_v60 }
 0x3a0   :  { %254 = vadd.xlane.f32.xlu0 %v253_v62 }
 0x3a1   :  { %v256_v1 = vsel %vm72_vm1, %v252_v63, 0.0 }
 0x3a2   :  { %257 = vadd.xlane.f32.xlu1 %v256_v1 }
 0x3b3   :  { %421 = vrot.lane.b32.xlu1 %v514_v4, %s648_s30 }
 0x42d   :  { %v255_v5 = vpop.xlane.xlu0 %254 }
 0x42e   :  { %v259_v6 = vmul.f32 0.03125, %v255_v5 }
 0x42f   :  { %v258_v7 = vpop.xlane.xlu1 %257 }
 0x430   :  { %v261_v8 = vadd.f32 1e-05, %v259_v6  ;;  %v260_v9 = vmul.f32 0.03125, %v258_v7 }
 0x432   :  { %579 = vrsqrt.f32 %v261_v8  ;;  %v262_v10 = vadd.f32 1e-05, %v260_v9 }
 0x433   :  { %v422_v51 = vpop.permute.xlu1 %421 }
 0x434   :  { %581 = vrsqrt.f32 %v262_v10 }
 0x43c   :  { %v580_v11 = vpop.eup %579 }
 0x43d   :  { %v265_v12 = vmul.f32 %v580_v11, %v249_v58 }
 0x43e   :  { %v582_v13 = vpop.eup %581 }
 0x43f   :  { %v271_v15 = vmul.f32 %v508_v0, %v265_v12  ;;  %v266_v16 = vmul.f32 %v582_v13, %v250_v60 }
 0x441   :  { %v277_v17 = vadd.f32 %v509_v14, %v271_v15  ;;  %v272_v18 = vmul.f32 %v508_v0, %v266_v16 }
 0x443   :  { %v279_v19 = vmax.f32 %v277_v17, 0.0  ;;  %v278_v20 = vadd.f32 %v509_v14, %v272_v18 }
 0x445   :  { %v281_v21 = vsel %vm72_vm1, %v279_v19, 0.0  ;;  %v280_v22 = vmax.f32 %v278_v20, 0.0  ;;  %v515_v20 = vld [vmem:[%s805_s4 + $0x8] ss:$0 sm:$0xff]  ;;  %s653_s4 = smov [#allocation5]  }
 0x446   :  { %v282_v23 = vrot.slane %v281_v21, 4  ;;  %s486_s15 = sshll.u32 %s653_s4, 4  ;;  %s487_s15 = int_to_ptr.vmem [resolvable:$true] %s486_s15 }
 0x447   :  { %v288_v24 = vsel %vm72_vm1, %v280_v22, 0.0  ;;  %s617_s16 = scalar_lea.vmem %s487_s15, 32  ;;  %p622_p9 = scmp.lt.s32.totalorder %s487_s15, %s487_s15 }
 0x448   :  { %v283_v25 = vadd.f32 %v282_v23, %v281_v21  ;;  %v289_v26 = vrot.slane %v288_v24, 4  ;;  %p618_p8 = scmp.ne.s32.totalorder %s487_s15, %s617_s16  ;;  %p623_p10 = scmp.lt.s32.totalorder %s617_s16, %s617_s16 }
 0x44a   :  { %v290_v27 = vadd.f32 %v289_v26, %v288_v24  ;;  %v284_v28 = vrot.slane %v283_v25, 2  ;;  %p624_p11 = por %p623_p10, %p622_p9 }
 0x44c   :  { %v285_v29 = vadd.f32 %v284_v28, %v283_v25  ;;  %v291_v30 = vrot.slane %v290_v27, 2  ;;  %p625_p12 = pnand %p624_p11, %p618_p8 }
 0x44e   :  { %v286_v31 = vrot.slane %v285_v29, 1  ;;  %v292_v32 = vadd.f32 %v291_v30, %v290_v27 }
 0x450   :  { %v287_v33 = vadd.f32 %v286_v31, %v285_v29  ;;  %v293_v34 = vrot.slane %v292_v32, 1 }
 0x452   :  { %v294_v35 = vadd.f32 %v293_v34, %v292_v32  ;;  %v295_v36 = vpack.c.bf16 %v287_v33, %v287_v33 }
 0x454   :  { %v296_v37 = vpack.c.bf16 %v294_v35, %v294_v35  ;;  %v307_v38 = vunpack.c.l.b16 %v295_v36 }
 0x456   :  { %v308_v39 = vunpack.c.l.b16 %v296_v37 }
 0x458   :  { %v310_v40 = vsel %vm309_vm3, %v308_v39, %v307_v38 }
 0x459   :  { %v311_v41 = vpack.c.b16 %v310_v40, %v310_v40 }
 0x45b   :  { %552 = vmatmul.mubr.msk.bf16.vlgmr.msra.gmra.mrb[4].mxu0 %vm72_vm1, %v311_v41 }
 0x52e   :  { %v361_v43 = vpop.f32.mrb[4].mxu0 }
 0x52f   :  { %v769_v44 = vadd.f32 %v510_v42, %v361_v43  ;;  %v553_v45 = vpop.f32.mrb[5].mxu0 }
 0x530   :  { %v364_v46 = vpop.f32.mrb[6].mxu0 }
 0x531   :  { %v554_v47 = vpop.f32.mrb[7].mxu0  ;;  %v381_v48 = vsel %vm380_vm4, %v769_v44, -inf  ;;  %v369_v49 = vsel %vm368_vm5, %v769_v44, -inf  ;;  %v367_v50 = vmax.f32 %v769_v44, 0.0 }
 0x532   :  { %382 = vmax.xlane.f32.xlu0 %v381_v48 }
 0x533   :  { %v424_v52 = vmul.f32 %v422_v51, %v367_v50 }
 0x536   :  { %370 = vmax.xlane.f32.xlu0 %v369_v49 }
 0x54c   :  { %426 = vrot.lane.b32.xlu0 %v424_v52, %s649_s0 }
 0x5bf   :  { %v383_v54 = vpop.xlane.xlu0 %382 }
 0x5c0   :  { %v384_v55 = vsub.f32 %v769_v44, %v383_v54 }
 0x5c2   :  { %v385_v57 = vmul.f32 1.442695, %v384_v55 }
 0x5c3   :  { %v371_v58 = vpop.xlane.xlu0 %370 }
 0x5c4   :  { %583 = vpow2.f32 %v385_v57  ;;  %vm399_vm6 = vcmp.eq.f32.partialorder %v769_v44, %v371_v58  ;;  %v372_v1 = vsub.f32 %v769_v44, %v371_v58 }
 0x5c5   :  { %v400_v59 = vsel %vm399_vm6, %v398_v56, 16 }
 0x5c6   :  { %v401_v60 = vsel %vm368_vm5, %v400_v59, 2147483647  ;;  %v373_v2 = vmul.f32 1.442695, %v372_v1 }
 0x5c7   :  { %v403_v61 = vshra.s32 %v401_v60, 16  ;;  %v427_v5 = vpop.permute.xlu0 %426  ;;  %v402_v9 = vand.u32 65535, %v401_v60 }
 0x5c8   :  { %585 = vpow2.f32 %v373_v2  ;;  %v429_v6 = vsel %vm368_vm5, %v427_v5, 0.0 }
 0x5c9   :  { %v405_v62 = vcvt.s32.f32 %v403_v61  ;;  %v404_v11 = vcvt.s32.f32 %v402_v9 }
 0x5cb   :  { %406 = vmin.xlane.f32.xlu0 %v405_v62 }
 0x5ce   :  { %v584_v63 = vpop.eup %583 }
 0x5cf   :  { %388 = vrot.lane.b32.xlu1 %v584_v63, %s650_s11 }
 0x5d2   :  { %v586_v3 = vpop.eup %585 }
 0x5d3   :  { %v375_v4 = vsel %vm368_vm5, %v586_v3, 0.0 }
 0x5f3   :  { %376 = vadd.xlane.f32.xlu1 %v375_v4 }
 0x5f7   :  { %430 = vadd.xlane.f32.xlu1 %v429_v6 }
 0x641   :  { %v389_v7 = vpop.permute.xlu1 %388 }
 0x642   :  { %v392_v8 = vsel %vm391_vm7, %v389_v7, 0.0 }
 0x643   :  { %393 = vadd.xlane.f32.xlu0 %v392_v8 }
 0x658   :  { %v407_v10 = vpop.xlane.xlu0 %406 }
 0x659   :  { %vm408_vm8 = vcmp.eq.f32.partialorder %v405_v62, %v407_v10  ;;  %v413_v32 = vcvt.f32.s32 %v407_v10 }
 0x65a   :  { %v409_v0 = vsel %vm408_vm8, %v404_v11, inf }
 0x65b   :  { %410 = vmin.xlane.f32.xlu1 %v409_v0  ;;  %v414_v34 = vshll.u32 %v413_v32, 16 }
 0x680   :  { %v377_v12 = vpop.xlane.xlu1 %376 }
 0x681   :  { %587 = vrcp.f32 %v377_v12 }
 0x684   :  { %v431_v21 = vpop.xlane.xlu1 %430 }
 0x685   :  { %v436_v22 = vadd.f32 %v515_v20, %v431_v21 }
 0x687   :  { %v437_v23 = vmul.f32 0.5, %v436_v22 }
 0x68b   :  { %v588_v13 = vpop.eup %587 }
 0x68c   :  { %v379_v14 = vmul.f32 %v588_v13, %v586_v3 }
 0x68e   :  { %451 = vrot.lane.b32.xlu1 %v379_v14, %s651_s1  ;;  %v441_v15 = vadd.f32 1e-08, %v379_v14 }
 0x690   :  { %589 = vlog2.f32 %v441_v15 }
 0x691   :  { %591 = vtanh.f32 %v437_v23 }
 0x69a   :  { %v590_v16 = vpop.eup %589 }
 0x69b   :  { %v443_v17 = vmul.f32 0.6931472, %v590_v16  ;;  %v592_v25 = vpop.eup %591 }
 0x69c   :  { %v439_v27 = vadd.f32 1.0, %v592_v25 }
 0x69d   :  { %v444_v18 = vmul.f32 %v443_v17, %v379_v14 }
 0x69e   :  { %v440_v29 = vmul.f32 0.5, %v439_v27 }
 0x69f   :  { %v445_v19 = vsel %vm368_vm5, %v444_v18, 0.0 }
 0x6a0   :  { %446 = vadd.xlane.f32.xlu0 %v445_v19 }
 0x6b6   :  { %455 = vrot.lane.b32.xlu0 %v769_v44, %s651_s1 }
 0x6d0   :  { %v394_v24 = vpop.xlane.xlu0 %393 }
 0x6d1   :  { %593 = vrcp.f32 %v394_v24 }
 0x6db   :  { %v594_v26 = vpop.eup %593 }
 0x6dc   :  { %v396_v28 = vmul.f32 %v594_v26, %v584_v63 }
 0x6de   :  { %459 = vrot.lane.b32.xlu1 %v396_v28, %s648_s30 }
 0x6e2   :  { %463 = vrot.lane.b32.xlu1 %v440_v29, %s652_s14 }
 0x6e8   :  { %v411_v30 = vpop.xlane.xlu1 %410 }
 0x6e9   :  { %v412_v33 = vcvt.f32.s32 %v411_v30 }
 0x6eb   :  { %v415_v37 = vadd.s32 %v414_v34, %v412_v33 }
 0x6ed   :  { %v449_v42 = vcvt.s32.f32 %v415_v37 }
 0x700   :  { %v452_v35 = vpop.permute.xlu1 %451 }
 0x701   :  { %v467_v38 = vsel %vm466_vm9, %v769_v44, %v452_v35 }
 0x72d   :  { %v447_v31 = vpop.xlane.xlu0 %446 }
 0x72e   :  { %v448_v43 = vsub.f32 0.0, %v447_v31 }
 0x731   :  { %v456_v36 = vpop.permute.xlu0 %455 }
 0x732   :  { %v468_v39 = vsel %vm72_vm1, %v467_v38, %v456_v36 }
 0x750   :  { %v460_v40 = vpop.permute.xlu1 %459 }
 0x751   :  { %v470_v41 = vsel %vm469_vm10, %v468_v39, %v460_v40 }
 0x752   :  { %v472_v45 = vsel %vm471_vm11, %v470_v41, %v449_v42 }
 0x754   :  { %v464_v46 = vpop.permute.xlu1 %463 }
 0x755   :  { %v474_v47 = vsel %vm473_vm12, %v472_v45, %v464_v46 }
 0x756   :  { %v476_v48 = vsel %vm475_vm13, %v474_v47, %v448_v43 }
 0x757   :  { %v478_v49 = vsel %vm477_vm14, %v476_v48, 0.0 }
 0x758   :  { %479 = vst [vmem:[#allocation5] sm:$0x3] %v478_v49 }
 0x759   :  { %628 = shalt.err (!%p625_p12)
}
 0x75a   :  { %s629_s19 = scalar_lea.hbm %s806_s5, 32 }
 0x75b   :  { %p630_p13 = scmp.ne.s32.totalorder %s806_s5, %s629_s19  ;;  %p633_p0 = scmp.lt.u32.totalorder %s629_s19, %s806_s5 }
 0x75d   :  { %p635_p1 = pnand %p633_p0, %p630_p13 }
 0x75f   :  { %638 = shalt.err (!%p635_p1)
}
 0x760   :  { %489 = dma.vmem_to_hbm [thread:$0]  %s487_s15, 32, %s806_s5, [#allocation4]  }
 0x761   :  { %641 = dma.done.wait [#allocation4], 32  }
 0x762   :  { %642 = vsyncadd [#allocation4], 4294967264 }
 0x763   :  { %493 = vsyncpa [#allocation3], 1 }
 0x764   :  { %494 = vsyncpa [#allocation4], 1 }

// kernel: tpu_custom_call.1
= control target key start
LH: loop header
LB: loop body
LE: loop exit
PB: predicated region body
PF: predicated region fallthrough
CT: control target
= control target key end

     0   :  { %10 = vsyncpa [#allocation3], 0  ;;  %s801_s0 = inlined_call_operand.hbm [shape: bf16[2,8,32], index: 0, kind: input, shape index: {}]   ;;  %s802_s1 = inlined_call_operand.vmem [shape: bf16[32,64], index: 1, kind: input, shape index: {}]   ;;  %s803_s2 = inlined_call_operand.vmem [shape: bf16[64,32], index: 2, kind: input, shape index: {}]   ;;  %s804_s3 = inlined_call_operand.vmem [shape: bf16[32,128], index: 3, kind: input, shape index: {}]   ;;  %s805_s4 = inlined_call_operand.vmem [shape: f32[9,128], index: 4, kind: input, shape index: {}]   ;;  %s806_s5 = inlined_call_operand.hbm [shape: f32[2,128], index: 5, kind: output, shape index: {}]  }
   0x1   :  { %11 = vsyncpa [#allocation4], 0  ;;  %s643_s18 = smov [#allocation2]   ;;  %s595_s22 = scalar_lea.hbm %s801_s0, 128 }
   0x2   :  { %s17_s19 = sshll.u32 %s643_s18, 4  ;;  %p596_p0 = scmp.ne.s32.totalorder %s801_s0, %s595_s22  ;;  %s18_s19 = int_to_ptr.vmem [resolvable:$true] %s17_s19 }
   0x3   :  { %p599_p1 = scmp.lt.u32.totalorder %s595_s22, %s801_s0 }
   0x5   :  { %p601_p2 = pnand %p599_p1, %p596_p0 }
   0x7   :  { %604 = shalt.err (!%p601_p2)
}
   0x8   :  { %s605_s27 = scalar_lea.vmem %s18_s19, 128  ;;  %p610_p4 = scmp.lt.s32.totalorder %s18_s19, %s18_s19 }
   0x9   :  { %p606_p3 = scmp.ne.s32.totalorder %s18_s19, %s605_s27  ;;  %p611_p5 = scmp.lt.s32.totalorder %s605_s27, %s605_s27 }
   0xb   :  { %p612_p6 = por %p611_p5, %p610_p4 }
   0xd   :  { %p613_p7 = pnand %p612_p6, %p606_p3 }
   0xf   :  { %616 = shalt.err (!%p613_p7)
}
  0x10   :  { %s644_s28 = smov 64   ;;  %s645_s29 = smov 4  }
  0x11   :  { %23 = dma.hbm_to_vmem [thread:$0]  %s801_s0, 128, %s18_s19, [#allocation3], %s644_s28, %s644_s28, %s645_s29  }
  0x12   :  { %639 = dma.done.wait [#allocation3], 128  }
  0x13   :  { %640 = vsyncadd [#allocation3], 4294967168  ;;  %v646_v0 = vmov 0.0   ;;  %vm647_vm0 = vmmov 0   ;;  %v566_v1 = vld [vmem:[%s802_s1] sm:$0xff]   ;;  %v567_v2 = vld [vmem:[%s802_s1 + $0x8] sm:$0xff]  }
  0x14   :  { %527 = vmatprep.subr.bf16.mxu0 %v646_v0  ;;  %531 = vmatprep.mubr.msk.bf16.mxu0 %vm647_vm0, %v646_v0  ;;  %v568_v3 = vld [vmem:[#allocation2] sm:$0xff]   ;;  %vm72_vm1 = vcmask 261120   ;;  %vm117_vm2 = vcmask 523264   ;;  %v570_v24 = vld [vmem:[%s803_s2 + $0x8] sm:$0xff]   ;;  %v571_v25 = vld [vmem:[%s803_s2 + $0x10] sm:$0xff]   ;;  %s648_s30 = smov 24  }
  0x15   :  { %535 = vmatprep.subr.bf16.mxu1 %v646_v0  ;;  %543 = vmatprep.mubr.msk.bf16.mxu1 %vm647_vm0, %v646_v0  ;;  %v495_v4 = vld [vmem:[%s805_s4] ss:$0 sm:$0xff]  ;;  %v572_v26 = vld [vmem:[%s803_s2 + $0x18] sm:$0xff]   ;;  %v500_v34 = vld [vmem:[%s805_s4 + $0x1] ss:$0 sm:$0xff]  ;;  %vm309_vm3 = vcmask 1041409  }
  0x16   :  { %528 = vmatpush3.bf16.msra.mxu0 %v566_v1  ;;  %v569_v23 = vld [vmem:[%s803_s2] sm:$0xff]   ;;  %vm380_vm4 = vcmask 189568   ;;  %vm368_vm5 = vcmask 123904   ;;  %s649_s0 = smov 104   ;;  %s650_s11 = smov 112   ;;  %vm391_vm7 = vcmask 58368  }
  0x17   :  { %529 = vmatprep.subr.bf16.mxu0 %v646_v0  ;;  %536 = vmatpush3.bf16.msra.mxu1 %v569_v23  ;;  %v501_v38 = vld [vmem:[%s805_s4 + $0x2] ss:$0 sm:$0xff]  ;;  %v502_v46 = vld [vmem:[%s805_s4 + $0x3] ss:$0 sm:$0xff]  ;;  %s651_s1 = smov 16   ;;  %s652_s14 = smov 49  }
  0x18   :  { %537 = vmatprep.subr.bf16.mxu1 %v646_v0  ;;  %vm466_vm9 = vcmask 130048   ;;  %vm469_vm10 = vcmask 326656   ;;  %vm471_vm11 = vcmask 392192   ;;  %vm473_vm12 = vcmask 400384  }
  0x19   :  { %vm475_vm13 = vcmask 408576   ;;  %vm477_vm14 = vcmask 416768  }
  0x1a   :  { %530 = vmatpush3.bf16.msra.mxu0 %v567_v2  ;;  %v573_v2 = vld [vmem:[%s804_s3] sm:$0xff]  }
  0x1b   :  { %547 = vmatprep.subr.bf16.mxu0 %v646_v0  ;;  %538 = vmatpush3.bf16.msra.mxu1 %v570_v24 }
  0x1c   :  { %539 = vmatprep.subr.bf16.mxu1 %v646_v0 }
  0x1d   :  { %532 = vmatmul.mubr.msk.bf16.vlgmr.msra.gmra.mrb[0].mxu0 %vm72_vm1, %v568_v3  ;;  %v574_v3 = vld [vmem:[%s804_s3 + $0x8] sm:$0xff]  }
  0x1e   :  { %551 = vmatprep.mubr.msk.bf16.mxu0 %vm647_vm0, %v646_v0  ;;  %548 = vmatpush3.bf16.msra.mxu0 %v573_v2 }
  0x1f   :  { %540 = vmatpush3.bf16.msra.mxu1 %v571_v25  ;;  %549 = vmatprep.subr.bf16.mxu0 %v646_v0 }
  0x20   :  { %541 = vmatprep.subr.bf16.mxu1 %v646_v0  ;;  %v508_v0 = vld [vmem:[%s805_s4 + $0x4] ss:$0 sm:$0xff] }
  0x22   :  { %550 = vmatpush3.bf16.msra.mxu0 %v574_v3 }
  0x23   :  { %542 = vmatpush3.bf16.msra.mxu1 %v572_v26 }
  0xf0   :  { %v110_v5 = vpop.f32.mrb[0].mxu0 }
  0xf1   :  { %v111_v6 = vadd.f32 %v495_v4, %v110_v5  ;;  %v533_v7 = vpop.f32.mrb[1].mxu0 }
  0xf2   :  { %v113_v8 = vpop.f32.mrb[2].mxu0 }
  0xf3   :  { %v114_v9 = vadd.f32 %v495_v4, %v113_v8  ;;  %v534_v10 = vpop.f32.mrb[3].mxu0  ;;  %v118_v11 = vsel %vm117_vm2, %v111_v6, 0.0  ;;  %v514_v4 = vld [vmem:[%s805_s4 + $0x7] ss:$0 sm:$0xff] }
  0xf4   :  { %119 = vadd.xlane.f32.xlu0 %v118_v11 }
  0xf5   :  { %v121_v12 = vsel %vm117_vm2, %v114_v9, 0.0 }
  0xf8   :  { %122 = vadd.xlane.f32.xlu0 %v121_v12 }
 0x181   :  { %v120_v13 = vpop.xlane.xlu0 %119 }
 0x182   :  { %v125_v14 = vmul.f32 0.015625, %v120_v13 }
 0x184   :  { %v127_v15 = vsub.f32 %v111_v6, %v125_v14  ;;  %v509_v14 = vld [vmem:[%s805_s4 + $0x5] ss:$0 sm:$0xff] }
 0x185   :  { %v123_v16 = vpop.xlane.xlu0 %122 }
 0x186   :  { %v126_v17 = vmul.f32 0.015625, %v123_v16  ;;  %v129_v18 = vmul.f32 %v127_v15, %v127_v15 }
 0x188   :  { %v128_v19 = vsub.f32 %v114_v9, %v126_v17  ;;  %v131_v20 = vsel %vm117_vm2, %v129_v18, 0.0 }
 0x189   :  { %132 = vadd.xlane.f32.xlu1 %v131_v20 }
 0x18a   :  { %v130_v21 = vmul.f32 %v128_v19, %v128_v19 }
 0x18c   :  { %v134_v22 = vsel %vm117_vm2, %v130_v21, 0.0 }
 0x18d   :  { %135 = vadd.xlane.f32.xlu1 %v134_v22 }
 0x216   :  { %v133_v27 = vpop.xlane.xlu1 %132 }
 0x217   :  { %v137_v28 = vmul.f32 0.015625, %v133_v27 }
 0x219   :  { %v139_v29 = vadd.f32 1e-05, %v137_v28 }
 0x21a   :  { %v136_v30 = vpop.xlane.xlu1 %135 }
 0x21b   :  { %575 = vrsqrt.f32 %v139_v29  ;;  %v138_v31 = vmul.f32 0.015625, %v136_v30 }
 0x21d   :  { %v140_v32 = vadd.f32 1e-05, %v138_v31 }
 0x21f   :  { %577 = vrsqrt.f32 %v140_v32 }
 0x225   :  { %v576_v33 = vpop.eup %575 }
 0x226   :  { %v143_v35 = vmul.f32 %v576_v33, %v127_v15 }
 0x228   :  { %v149_v36 = vmul.f32 %v500_v34, %v143_v35 }
 0x229   :  { %v578_v37 = vpop.eup %577 }
 0x22a   :  { %v144_v39 = vmul.f32 %v578_v37, %v128_v19  ;;  %v155_v41 = vadd.f32 %v501_v38, %v149_v36 }
 0x22c   :  { %v150_v40 = vmul.f32 %v500_v34, %v144_v39  ;;  %v157_v43 = vmax.f32 %v155_v41, 0.0 }
 0x22e   :  { %v156_v42 = vadd.f32 %v501_v38, %v150_v40 }
 0x230   :  { %v158_v44 = vmax.f32 %v156_v42, 0.0  ;;  %v510_v42 = vld [vmem:[%s805_s4 + $0x6] ss:$0 sm:$0xff] }
 0x232   :  { %v159_v45 = vpack.c.bf16 %v158_v44, %v157_v43 }
 0x234   :  { %544 = vmatmul.mubr.msk.bf16.vlgmr.msra.gmra.mrb[0].mxu1 %vm117_vm2, %v159_v45 }
 0x307   :  { %v233_v47 = vpop.f32.mrb[0].mxu1 }
 0x308   :  { %v234_v48 = vadd.f32 %v502_v46, %v233_v47  ;;  %v545_v49 = vpop.f32.mrb[1].mxu1 }
 0x309   :  { %v236_v50 = vpop.f32.mrb[2].mxu1 }
 0x30a   :  { %v237_v51 = vadd.f32 %v502_v46, %v236_v50  ;;  %v546_v52 = vpop.f32.mrb[3].mxu1  ;;  %v240_v53 = vsel %vm72_vm1, %v234_v48, 0.0 }
 0x30b   :  { %241 = vadd.xlane.f32.xlu0 %v240_v53  ;;  %v397_v53 = vlaneseq }
 0x30c   :  { %v243_v54 = vsel %vm72_vm1, %v237_v51, 0.0 }
 0x30d   :  { %244 = vadd.xlane.f32.xlu1 %v243_v54 }
 0x398   :  { %v242_v55 = vpop.xlane.xlu0 %241 }
 0x399   :  { %v247_v56 = vmul.f32 0.03125, %v242_v55 }
 0x39a   :  { %v245_v57 = vpop.xlane.xlu1 %244 }
 0x39b   :  { %v249_v58 = vsub.f32 %v234_v48, %v247_v56  ;;  %v248_v59 = vmul.f32 0.03125, %v245_v57  ;;  %v398_v56 = vand.u32 127, %v397_v53 }
 0x39d   :  { %v250_v60 = vsub.f32 %v237_v51, %v248_v59  ;;  %v251_v61 = vmul.f32 %v249_v58, %v249_v58 }
 0x39f   :  { %v253_v62 = vsel %vm72_vm1, %v251_v61, 0.0  ;;  %v252_v63 = vmul.f32 %v250_v60, %v250_v60 }
 0x3a0   :  { %254 = vadd.xlane.f32.xlu0 %v253_v62 }
 0x3a1   :  { %v256_v1 = vsel %vm72_vm1, %v252_v63, 0.0 }
 0x3a2   :  { %257 = vadd.xlane.f32.xlu1 %v256_v1 }
 0x3b3   :  { %421 = vrot.lane.b32.xlu1 %v514_v4, %s648_s30 }
 0x42d   :  { %v255_v5 = vpop.xlane.xlu0 %254 }
 0x42e   :  { %v259_v6 = vmul.f32 0.03125, %v255_v5 }
 0x42f   :  { %v258_v7 = vpop.xlane.xlu1 %257 }
 0x430   :  { %v261_v8 = vadd.f32 1e-05, %v259_v6  ;;  %v260_v9 = vmul.f32 0.03125, %v258_v7 }
 0x432   :  { %579 = vrsqrt.f32 %v261_v8  ;;  %v262_v10 = vadd.f32 1e-05, %v260_v9 }
 0x433   :  { %v422_v51 = vpop.permute.xlu1 %421 }
 0x434   :  { %581 = vrsqrt.f32 %v262_v10 }
 0x43c   :  { %v580_v11 = vpop.eup %579 }
 0x43d   :  { %v265_v12 = vmul.f32 %v580_v11, %v249_v58 }
 0x43e   :  { %v582_v13 = vpop.eup %581 }
 0x43f   :  { %v271_v15 = vmul.f32 %v508_v0, %v265_v12  ;;  %v266_v16 = vmul.f32 %v582_v13, %v250_v60 }
 0x441   :  { %v277_v17 = vadd.f32 %v509_v14, %v271_v15  ;;  %v272_v18 = vmul.f32 %v508_v0, %v266_v16 }
 0x443   :  { %v279_v19 = vmax.f32 %v277_v17, 0.0  ;;  %v278_v20 = vadd.f32 %v509_v14, %v272_v18 }
 0x445   :  { %v281_v21 = vsel %vm72_vm1, %v279_v19, 0.0  ;;  %v280_v22 = vmax.f32 %v278_v20, 0.0  ;;  %v515_v20 = vld [vmem:[%s805_s4 + $0x8] ss:$0 sm:$0xff]  ;;  %s653_s4 = smov [#allocation5]  }
 0x446   :  { %v282_v23 = vrot.slane %v281_v21, 4  ;;  %s486_s15 = sshll.u32 %s653_s4, 4  ;;  %s487_s15 = int_to_ptr.vmem [resolvable:$true] %s486_s15 }
 0x447   :  { %v288_v24 = vsel %vm72_vm1, %v280_v22, 0.0  ;;  %s617_s16 = scalar_lea.vmem %s487_s15, 32  ;;  %p622_p9 = scmp.lt.s32.totalorder %s487_s15, %s487_s15 }
 0x448   :  { %v283_v25 = vadd.f32 %v282_v23, %v281_v21  ;;  %v289_v26 = vrot.slane %v288_v24, 4  ;;  %p618_p8 = scmp.ne.s32.totalorder %s487_s15, %s617_s16  ;;  %p623_p10 = scmp.lt.s32.totalorder %s617_s16, %s617_s16 }
 0x44a   :  { %v290_v27 = vadd.f32 %v289_v26, %v288_v24  ;;  %v284_v28 = vrot.slane %v283_v25, 2  ;;  %p624_p11 = por %p623_p10, %p622_p9 }
 0x44c   :  { %v285_v29 = vadd.f32 %v284_v28, %v283_v25  ;;  %v291_v30 = vrot.slane %v290_v27, 2  ;;  %p625_p12 = pnand %p624_p11, %p618_p8 }
 0x44e   :  { %v286_v31 = vrot.slane %v285_v29, 1  ;;  %v292_v32 = vadd.f32 %v291_v30, %v290_v27 }
 0x450   :  { %v287_v33 = vadd.f32 %v286_v31, %v285_v29  ;;  %v293_v34 = vrot.slane %v292_v32, 1 }
 0x452   :  { %v294_v35 = vadd.f32 %v293_v34, %v292_v32  ;;  %v295_v36 = vpack.c.bf16 %v287_v33, %v287_v33 }
 0x454   :  { %v296_v37 = vpack.c.bf16 %v294_v35, %v294_v35  ;;  %v307_v38 = vunpack.c.l.b16 %v295_v36 }
 0x456   :  { %v308_v39 = vunpack.c.l.b16 %v296_v37 }
 0x458   :  { %v310_v40 = vsel %vm309_vm3, %v308_v39, %v307_v38 }
 0x459   :  { %v311_v41 = vpack.c.b16 %v310_v40, %v310_v40 }
 0x45b   :  { %552 = vmatmul.mubr.msk.bf16.vlgmr.msra.gmra.mrb[4].mxu0 %vm72_vm1, %v311_v41 }
 0x52e   :  { %v361_v43 = vpop.f32.mrb[4].mxu0 }
 0x52f   :  { %v769_v44 = vadd.f32 %v510_v42, %v361_v43  ;;  %v553_v45 = vpop.f32.mrb[5].mxu0 }
 0x530   :  { %v364_v46 = vpop.f32.mrb[6].mxu0 }
 0x531   :  { %v554_v47 = vpop.f32.mrb[7].mxu0  ;;  %v381_v48 = vsel %vm380_vm4, %v769_v44, -inf  ;;  %v369_v49 = vsel %vm368_vm5, %v769_v44, -inf  ;;  %v367_v50 = vmax.f32 %v769_v44, 0.0 }
 0x532   :  { %382 = vmax.xlane.f32.xlu0 %v381_v48 }
 0x533   :  { %v424_v52 = vmul.f32 %v422_v51, %v367_v50 }
 0x536   :  { %370 = vmax.xlane.f32.xlu0 %v369_v49 }
 0x54c   :  { %426 = vrot.lane.b32.xlu0 %v424_v52, %s649_s0 }
 0x5bf   :  { %v383_v54 = vpop.xlane.xlu0 %382 }
 0x5c0   :  { %v384_v55 = vsub.f32 %v769_v44, %v383_v54 }
 0x5c2   :  { %v385_v57 = vmul.f32 1.442695, %v384_v55 }
 0x5c3   :  { %v371_v58 = vpop.xlane.xlu0 %370 }
 0x5c4   :  { %583 = vpow2.f32 %v385_v57  ;;  %vm399_vm6 = vcmp.eq.f32.partialorder %v769_v44, %v371_v58  ;;  %v372_v1 = vsub.f32 %v769_v44, %v371_v58 }
 0x5c5   :  { %v400_v59 = vsel %vm399_vm6, %v398_v56, 16 }
 0x5c6   :  { %v401_v60 = vsel %vm368_vm5, %v400_v59, 2147483647  ;;  %v373_v2 = vmul.f32 1.442695, %v372_v1 }
 0x5c7   :  { %v403_v61 = vshra.s32 %v401_v60, 16  ;;  %v427_v5 = vpop.permute.xlu0 %426  ;;  %v402_v9 = vand.u32 65535, %v401_v60 }
 0x5c8   :  { %585 = vpow2.f32 %v373_v2  ;;  %v429_v6 = vsel %vm368_vm5, %v427_v5, 0.0 }
 0x5c9   :  { %v405_v62 = vcvt.s32.f32 %v403_v61  ;;  %v404_v11 = vcvt.s32.f32 %v402_v9 }
 0x5cb   :  { %406 = vmin.xlane.f32.xlu0 %v405_v62 }
 0x5ce   :  { %v584_v63 = vpop.eup %583 }
 0x5cf   :  { %388 = vrot.lane.b32.xlu1 %v584_v63, %s650_s11 }
 0x5d2   :  { %v586_v3 = vpop.eup %585 }
 0x5d3   :  { %v375_v4 = vsel %vm368_vm5, %v586_v3, 0.0 }
 0x5f3   :  { %376 = vadd.xlane.f32.xlu1 %v375_v4 }
 0x5f7   :  { %430 = vadd.xlane.f32.xlu1 %v429_v6 }
 0x641   :  { %v389_v7 = vpop.permute.xlu1 %388 }
 0x642   :  { %v392_v8 = vsel %vm391_vm7, %v389_v7, 0.0 }
 0x643   :  { %393 = vadd.xlane.f32.xlu0 %v392_v8 }
 0x658   :  { %v407_v10 = vpop.xlane.xlu0 %406 }
 0x659   :  { %vm408_vm8 = vcmp.eq.f32.partialorder %v405_v62, %v407_v10  ;;  %v413_v32 = vcvt.f32.s32 %v407_v10 }
 0x65a   :  { %v409_v0 = vsel %vm408_vm8, %v404_v11, inf }
 0x65b   :  { %410 = vmin.xlane.f32.xlu1 %v409_v0  ;;  %v414_v34 = vshll.u32 %v413_v32, 16 }
 0x680   :  { %v377_v12 = vpop.xlane.xlu1 %376 }
 0x681   :  { %587 = vrcp.f32 %v377_v12 }
 0x684   :  { %v431_v21 = vpop.xlane.xlu1 %430 }
 0x685   :  { %v436_v22 = vadd.f32 %v515_v20, %v431_v21 }
 0x687   :  { %v437_v23 = vmul.f32 0.5, %v436_v22 }
 0x68b   :  { %v588_v13 = vpop.eup %587 }
 0x68c   :  { %v379_v14 = vmul.f32 %v588_v13, %v586_v3 }
 0x68e   :  { %451 = vrot.lane.b32.xlu1 %v379_v14, %s651_s1  ;;  %v441_v15 = vadd.f32 1e-08, %v379_v14 }
 0x690   :  { %589 = vlog2.f32 %v441_v15 }
 0x691   :  { %591 = vtanh.f32 %v437_v23 }
 0x69a   :  { %v590_v16 = vpop.eup %589 }
 0x69b   :  { %v443_v17 = vmul.f32 0.6931472, %v590_v16  ;;  %v592_v25 = vpop.eup %591 }
 0x69c   :  { %v439_v27 = vadd.f32 1.0, %v592_v25 }
 0x69d   :  { %v444_v18 = vmul.f32 %v443_v17, %v379_v14 }
 0x69e   :  { %v440_v29 = vmul.f32 0.5, %v439_v27 }
 0x69f   :  { %v445_v19 = vsel %vm368_vm5, %v444_v18, 0.0 }
 0x6a0   :  { %446 = vadd.xlane.f32.xlu0 %v445_v19 }
 0x6b6   :  { %455 = vrot.lane.b32.xlu0 %v769_v44, %s651_s1 }
 0x6d0   :  { %v394_v24 = vpop.xlane.xlu0 %393 }
 0x6d1   :  { %593 = vrcp.f32 %v394_v24 }
 0x6db   :  { %v594_v26 = vpop.eup %593 }
 0x6dc   :  { %v396_v28 = vmul.f32 %v594_v26, %v584_v63 }
 0x6de   :  { %459 = vrot.lane.b32.xlu1 %v396_v28, %s648_s30 }
 0x6e2   :  { %463 = vrot.lane.b32.xlu1 %v440_v29, %s652_s14 }
 0x6e8   :  { %v411_v30 = vpop.xlane.xlu1 %410 }
 0x6e9   :  { %v412_v33 = vcvt.f32.s32 %v411_v30 }
 0x6eb   :  { %v415_v37 = vadd.s32 %v414_v34, %v412_v33 }
 0x6ed   :  { %v449_v42 = vcvt.s32.f32 %v415_v37 }
 0x700   :  { %v452_v35 = vpop.permute.xlu1 %451 }
 0x701   :  { %v467_v38 = vsel %vm466_vm9, %v769_v44, %v452_v35 }
 0x72d   :  { %v447_v31 = vpop.xlane.xlu0 %446 }
 0x72e   :  { %v448_v43 = vsub.f32 0.0, %v447_v31 }
 0x731   :  { %v456_v36 = vpop.permute.xlu0 %455 }
 0x732   :  { %v468_v39 = vsel %vm72_vm1, %v467_v38, %v456_v36 }
 0x750   :  { %v460_v40 = vpop.permute.xlu1 %459 }
 0x751   :  { %v470_v41 = vsel %vm469_vm10, %v468_v39, %v460_v40 }
 0x752   :  { %v472_v45 = vsel %vm471_vm11, %v470_v41, %v449_v42 }
 0x754   :  { %v464_v46 = vpop.permute.xlu1 %463 }
 0x755   :  { %v474_v47 = vsel %vm473_vm12, %v472_v45, %v464_v46 }
 0x756   :  { %v476_v48 = vsel %vm475_vm13, %v474_v47, %v448_v43 }
 0x757   :  { %v478_v49 = vsel %vm477_vm14, %v476_v48, 0.0 }
 0x758   :  { %479 = vst [vmem:[#allocation5] sm:$0x3] %v478_v49 }
 0x759   :  { %628 = shalt.err (!%p625_p12)
}
 0x75a   :  { %s629_s19 = scalar_lea.hbm %s806_s5, 32 }
 0x75b   :  { %p630_p13 = scmp.ne.s32.totalorder %s806_s5, %s629_s19  ;;  %p633_p0 = scmp.lt.u32.totalorder %s629_s19, %s806_s5 }
 0x75d   :  { %p635_p1 = pnand %p633_p0, %p630_p13 }
 0x75f   :  { %638 = shalt.err (!%p635_p1)
}
 0x760   :  { %489 = dma.vmem_to_hbm [thread:$0]  %s487_s15, 32, %s806_s5, [#allocation4]  }
 0x761   :  { %641 = dma.done.wait [#allocation4], 32  }
 0x762   :  { %642 = vsyncadd [#allocation4], 4294967264 }
 0x763   :  { %493 = vsyncpa [#allocation3], 1 }
 0x764   :  { %494 = vsyncpa [#allocation4], 1 }

</bundles_post_ra>
